<compile_context>
chip_gen: v6e
topology: v6e:2x2x1
jax: 0.10.0
libtpu: 0.0.40
codegen_flags: <defaults>
</compile_context>

<pallas_src>
import functools

import jax
import jax.numpy as jnp
from jax import lax
from jax.experimental import pallas as pl
from jax.experimental.pallas import tpu as pltpu


def _sparse_attn_kernel(q_ref, k_ref, v_ref, o_ref, q_sc, m_sc, l_sc, acc_sc, *,
                        scale, compute_dtype):
    """Flash-style online-softmax attention over kv blocks, lane-dense stats/acc.

    Refs (per grid step):
      q_ref: (BB, TQ, D)          input dtype
      k_ref: (BB, TK, D)          compute dtype
      v_ref: (BB, TK, D+1)        compute dtype, last column is all-ones
      o_ref: (BB, D, TQ)          output (lane-dense; wrapper transposes back)
    Scratch (persists across the kv axis, which is last and 'arbitrary'):
      q_sc:   (BB, TQ, D)  scaled + cast q, written once per (b, qi) tile
      m_sc:   (BB, 1, TQ)  running max           (lane-dense)
      l_sc:   (BB, 1, TQ)  running denominator   (lane-dense)
      acc_sc: (BB, D, TQ)  running numerator f32 (lane-dense)
    """
    kv = pl.program_id(2)
    d = acc_sc.shape[1]

    @pl.when(kv == 0)
    def _():
        # Hoist softmax scale + cast of the kv-resident q block out of the kv loop.
        q_sc[...] = (q_ref[...] * scale).astype(compute_dtype)
        m_sc[...] = jnp.full_like(m_sc, -jnp.inf)
        l_sc[...] = jnp.zeros_like(l_sc)
        acc_sc[...] = jnp.zeros_like(acc_sc)

    q = q_sc[...]                               # (BB, TQ, D)
    k = k_ref[...]                              # (BB, TK, D)
    v = v_ref[...]                              # (BB, TK, D+1), last col = 1

    # Batched QK^T contracting the last dims directly (no k relayout), f32 acc.
    s = lax.dot_general(
        q, k,
        dimension_numbers=(((2,), (2,)), ((0,), (0,))),
        preferred_element_type=jnp.float32,
    )                                           # (BB, TQ, TK) f32

    # Local softmax for this kv block; global rescale factors kept lane-dense.
    s_max = jnp.max(s, axis=-1, keepdims=True)  # (BB, TQ, 1)
    p = jnp.exp(s - s_max)                      # (BB, TQ, TK) f32 (EUP)

    # PV in lane-dense orientation: (BB, TK, D+1) x (BB, TQ, TK) -> (BB, D+1, TQ).
    # The folded ones column makes row D of pv the softmax row-sum (no XLU sum).
    pv = lax.dot_general(
        v, p.astype(compute_dtype),
        dimension_numbers=(((1,), (2,)), ((0,), (0,))),
        preferred_element_type=jnp.float32,
    )                                           # (BB, D+1, TQ) f32

    # Single small relayout per step: (BB, TQ, 1) -> (BB, 1, TQ).
    s_max_t = jnp.transpose(s_max, (0, 2, 1))
    m_prev = m_sc[...]                          # (BB, 1, TQ)
    m_new = jnp.maximum(m_prev, s_max_t)
    alpha = jnp.exp(m_prev - m_new)             # rescale of the old accumulators
    beta = jnp.exp(s_max_t - m_new)             # rescale of this block's contribution

    l_sc[...] = alpha * l_sc[...] + beta * pv[:, d:, :]
    acc_sc[...] = alpha * acc_sc[...] + beta * pv[:, :d, :]
    m_sc[...] = m_new

    @pl.when(kv == pl.num_programs(2) - 1)
    def _():
        l = l_sc[...]
        # EUP approximate reciprocal + one Newton refinement: divide leaves the
        # VPU while keeping full f32 precision.
        r = pl.reciprocal(l, approx=True)
        r = r * (2.0 - l * r)
        o_ref[...] = (acc_sc[...] * r).astype(o_ref.dtype)


def _padded_vmem_bytes(shape, itemsize):
    """VMEM footprint of a buffer: lane dim padded to 128, sublane dim to 8."""
    lanes = -(-shape[-1] // 128) * 128
    subl = -(-shape[-2] // 8) * 8
    rest = 1
    for s in shape[:-2]:
        rest *= s
    return rest * subl * lanes * itemsize


def sparse_attention(q, k, v, *, heads, attn_mode="e", tq=512, tk=512,
                     batch_block=None, matmul_dtype="auto",
                     vmem_limit_bytes=None):
    """Equivalent of SparseAttention.forward with the default attn_mode='e'.

    matmul_dtype: 'auto' (bf16 MXU operands for f32 inputs, f32 accumulation and
                  f32 softmax statistics), a dtype, or None (use input dtype).
    """
    if attn_mode != "e":
        # TODO(synk): strided/local/all masked paths not implemented in Pallas.
        raise NotImplementedError("only attn_mode='e' is implemented")

    n, t, embd = q.shape
    assert k.shape == (n, t, embd) and v.shape == (n, t, embd)
    n_state = embd // heads
    scale = 1.0 / float(n_state) ** 0.5

    if matmul_dtype == "auto":
        cd = jnp.dtype(jnp.bfloat16) if q.dtype == jnp.float32 else jnp.dtype(q.dtype)
    elif matmul_dtype is None:
        cd = jnp.dtype(q.dtype)
    else:
        cd = jnp.dtype(matmul_dtype)

    tq = min(tq, t)
    tk = min(tk, t)
    assert t % tq == 0 and t % tk == 0, "seq must be divisible by tile sizes"

    # Generation-aware VMEM budget: ~96 MiB limit on v5e/v6e (128 MiB physical),
    # ~48 MiB on v7x (64 MiB physical). Fall back conservatively if unknown.
    try:
        phys_vmem = int(pltpu.get_tpu_info().vmem_capacity_bytes)
    except Exception:
        phys_vmem = 64 * 1024 * 1024
    if vmem_limit_bytes is None:
        vmem_limit_bytes = int(phys_vmem * 0.75)
    budget = int(vmem_limit_bytes * 0.85)

    in_b = q.dtype.itemsize
    cd_b = cd.itemsize
    da = embd + 1  # v augmented with the ones column

    def per_step_bytes(bb_, tq_, tk_):
        b = 0
        # double-buffered input / output tiles (lane padding counted)
        b += 2 * _padded_vmem_bytes((bb_, tq_, embd), in_b)   # q
        b += 2 * _padded_vmem_bytes((bb_, tk_, embd), cd_b)   # k
        b += 2 * _padded_vmem_bytes((bb_, tk_, da), cd_b)     # v (+ ones col)
        b += 2 * _padded_vmem_bytes((bb_, embd, tq_), in_b)   # out (lane-dense)
        # persistent scratch
        b += _padded_vmem_bytes((bb_, tq_, embd), cd_b)       # scaled/cast q
        b += 2 * _padded_vmem_bytes((bb_, 1, tq_), 4)         # m, l
        b += _padded_vmem_bytes((bb_, embd, tq_), 4)          # acc
        # compiler-managed (BB, TQ, TK) intermediates and pv
        b += _padded_vmem_bytes((bb_, tq_, tk_), 4)           # s (f32)
        b += _padded_vmem_bytes((bb_, tq_, tk_), 4 + cd_b)    # p + its cast
        b += _padded_vmem_bytes((bb_, da, tq_), 4)            # pv (f32)
        return int(b * 1.15)                                  # relayout / temp slack

    def pick_bb(tq_, tk_):
        max_bb = n
        # Keep >= 2 parallel grid steps when possible so v7x's 2nd TC has work.
        if (t // tq_) == 1 and n >= 2:
            max_bb = max(1, n // 2)
        for bb_try in range(max_bb, 0, -1):
            if n % bb_try:
                continue
            if per_step_bytes(bb_try, tq_, tk_) <= budget:
                return bb_try
        return None

    if batch_block is None:
        bb = pick_bb(tq, tk)
        while bb is None:
            # Even bb=1 is over budget: shrink the kv tile first, then the q tile.
            if tk > 128 and t % (tk // 2) == 0:
                tk //= 2
            elif tq > 128 and t % (tq // 2) == 0:
                tq //= 2
            else:
                bb = 1
                break
            bb = pick_bb(tq, tk)
    else:
        bb = batch_block
    assert n % bb == 0

    # Cast k once in the wrapper (halves its repeated HBM reads for bf16) and
    # build v augmented with a ones column so the softmax denominator comes out
    # of the PV matmul for free.
    k_c = k.astype(cd)
    v_aug = jnp.concatenate([v, jnp.ones((n, t, 1), dtype=v.dtype)], axis=-1).astype(cd)

    kernel = functools.partial(_sparse_attn_kernel, scale=scale, compute_dtype=cd)

    grid = (n // bb, t // tq, t // tk)
    out_t = pl.pallas_call(
        kernel,
        out_shape=jax.ShapeDtypeStruct((n, embd, t), q.dtype),
        grid_spec=pltpu.PrefetchScalarGridSpec(
            num_scalar_prefetch=0,
            grid=grid,
            in_specs=[
                pl.BlockSpec((bb, tq, embd), lambda b, qi, ki: (b, qi, 0)),
                pl.BlockSpec((bb, tk, embd), lambda b, qi, ki: (b, ki, 0)),
                pl.BlockSpec((bb, tk, embd + 1), lambda b, qi, ki: (b, ki, 0)),
            ],
            out_specs=pl.BlockSpec((bb, embd, tq), lambda b, qi, ki: (b, 0, qi)),
            scratch_shapes=[
                pltpu.VMEM((bb, tq, embd), cd),           # scaled / cast q
                pltpu.VMEM((bb, 1, tq), jnp.float32),     # m
                pltpu.VMEM((bb, 1, tq), jnp.float32),     # l
                pltpu.VMEM((bb, embd, tq), jnp.float32),  # acc
            ],
        ),
        compiler_params=pltpu.CompilerParams(
            dimension_semantics=("parallel", "parallel", "arbitrary"),
            vmem_limit_bytes=int(vmem_limit_bytes),
        ),
    )(q, k_c, v_aug)

    # Back to the module's [n, t, embd] layout.
    return jnp.transpose(out_t, (0, 2, 1))


def _reference(q, k, v, heads):
    n_state = q.shape[-1] // heads
    scale = 1.0 / float(n_state) ** 0.5
    w = jnp.einsum("btd,bsd->bts", q, k)
    w = jax.nn.softmax(w * scale, axis=-1)
    return jnp.einsum("bts,bsd->btd", w, v)


if __name__ == "__main__":
    # SparseAttention has no learnable parameters; only inputs are needed.
    heads = 4
    batch, seq, embd = 2, 256, 32  # small, tile-friendly shapes

    key = jax.random.PRNGKey(0)
    kq, kk, kv_ = jax.random.split(key, 3)
    q = jax.random.normal(kq, (batch, seq, embd), dtype=jnp.float32)
    k = jax.random.normal(kk, (batch, seq, embd), dtype=jnp.float32)
    v = jax.random.normal(kv_, (batch, seq, embd), dtype=jnp.float32)

    ref = _reference(q, k, v, heads)

    # Exact path: f32 MXU operands — tight tolerance.
    out_f32 = sparse_attention(q, k, v, heads=heads, matmul_dtype=jnp.float32)
    out_f32 = jax.block_until_ready(out_f32)
    assert out_f32.shape == (batch, seq, embd)
    assert jnp.allclose(out_f32, ref, atol=1e-4, rtol=1e-4), "f32 path mismatch"

    # Default fast path: bf16 MXU operands, f32 accumulation/statistics — loose tolerance.
    out_bf = sparse_attention(q, k, v, heads=heads)
    out_bf = jax.block_until_ready(out_bf)
    assert out_bf.shape == (batch, seq, embd)
    max_err = float(jnp.max(jnp.abs(out_bf - ref)))
    assert max_err < 1e-1, f"bf16 path max abs err too large: {max_err}"

    print("KERNEL_OK")
</pallas_src>

<mosaic_0001>
module attributes {stable_mosaic.version = 11 : i64} {
  func.func @_sparse_attn_kernel(%arg0: i32, %arg1: i32, %arg2: i32, %arg3: memref<1x256x32xf32, #tpu.memory_space<vmem>>, %arg4: memref<1x256x32xf32, #tpu.memory_space<vmem>>, %arg5: memref<1x256x33xf32, #tpu.memory_space<vmem>>, %arg6: memref<1x32x256xf32, #tpu.memory_space<vmem>>, %arg7: memref<1x256x32xf32, #tpu.memory_space<vmem>>, %arg8: memref<1x1x256xf32, #tpu.memory_space<vmem>>, %arg9: memref<1x1x256xf32, #tpu.memory_space<vmem>>, %arg10: memref<1x32x256xf32, #tpu.memory_space<vmem>>) attributes {dimension_semantics = [#tpu.dimension_semantics<parallel>, #tpu.dimension_semantics<parallel>, #tpu.dimension_semantics<arbitrary>], iteration_bounds = array<i64: 2, 1, 1>, scalar_prefetch = 0 : i64, scratch_operands = 4 : i64, tpu.core_type = #tpu.core_type<tc>, window_params = [{transform_indices = @transform_0, window_bounds = array<i64: 1, 256, 32>}, {transform_indices = @transform_1, window_bounds = array<i64: 1, 256, 32>}, {transform_indices = @transform_2, window_bounds = array<i64: 1, 256, 33>}, {transform_indices = @transform_3, window_bounds = array<i64: 1, 32, 256>}]} {
    %c0_i32 = arith.constant 0 : i32
    %0 = arith.cmpi eq, %arg2, %c0_i32 : i32
    %1 = arith.extui %0 : i1 to i32
    %c0_i32_0 = arith.constant 0 : i32
    %2 = arith.cmpi ne, %1, %c0_i32_0 : i32
    scf.if %2 {
      %c0_31 = arith.constant 0 : index
      %c0_32 = arith.constant 0 : index
      %c0_33 = arith.constant 0 : index
      %38 = vector.load %arg3[%c0_31, %c0_32, %c0_33] : memref<1x256x32xf32, #tpu.memory_space<vmem>>, vector<1x256x32xf32>
      %cst_34 = arith.constant 0.353553385 : f32
      %39 = vector.broadcast %cst_34 : f32 to vector<1x256x32xf32>
      %40 = arith.mulf %38, %39 : vector<1x256x32xf32>
      %c0_35 = arith.constant 0 : index
      %c0_36 = arith.constant 0 : index
      %c0_37 = arith.constant 0 : index
      %41 = vector.load %arg7[%c0_35, %c0_36, %c0_37] : memref<1x256x32xf32, #tpu.memory_space<vmem>>, vector<1x256x32xf32>
      tpu.vector_store %arg7[%c0_35, %c0_36, %c0_37], %40 {strides = array<i32>} : memref<1x256x32xf32, #tpu.memory_space<vmem>>, vector<1x256x32xf32>,
      %cst_38 = arith.constant 0xFF800000 : f32
      %42 = vector.broadcast %cst_38 : f32 to vector<1x1x256xf32>
      %c0_39 = arith.constant 0 : index
      %c0_40 = arith.constant 0 : index
      %c0_41 = arith.constant 0 : index
      %43 = vector.load %arg8[%c0_39, %c0_40, %c0_41] : memref<1x1x256xf32, #tpu.memory_space<vmem>>, vector<1x1x256xf32>
      tpu.vector_store %arg8[%c0_39, %c0_40, %c0_41], %42 {strides = array<i32>} : memref<1x1x256xf32, #tpu.memory_space<vmem>>, vector<1x1x256xf32>,
      %cst_42 = arith.constant 0.000000e+00 : f32
      %44 = vector.broadcast %cst_42 : f32 to vector<1x1x256xf32>
      %c0_43 = arith.constant 0 : index
      %c0_44 = arith.constant 0 : index
      %c0_45 = arith.constant 0 : index
      %45 = vector.load %arg9[%c0_43, %c0_44, %c0_45] : memref<1x1x256xf32, #tpu.memory_space<vmem>>, vector<1x1x256xf32>
      tpu.vector_store %arg9[%c0_43, %c0_44, %c0_45], %44 {strides = array<i32>} : memref<1x1x256xf32, #tpu.memory_space<vmem>>, vector<1x1x256xf32>,
      %cst_46 = arith.constant 0.000000e+00 : f32
      %46 = vector.broadcast %cst_46 : f32 to vector<1x32x256xf32>
      %c0_47 = arith.constant 0 : index
      %c0_48 = arith.constant 0 : index
      %c0_49 = arith.constant 0 : index
      %47 = vector.load %arg10[%c0_47, %c0_48, %c0_49] : memref<1x32x256xf32, #tpu.memory_space<vmem>>, vector<1x32x256xf32>
      tpu.vector_store %arg10[%c0_47, %c0_48, %c0_49], %46 {strides = array<i32>} : memref<1x32x256xf32, #tpu.memory_space<vmem>>, vector<1x32x256xf32>,
    } else {
    }
    %c0 = arith.constant 0 : index
    %c0_1 = arith.constant 0 : index
    %c0_2 = arith.constant 0 : index
    %3 = vector.load %arg7[%c0, %c0_1, %c0_2] : memref<1x256x32xf32, #tpu.memory_space<vmem>>, vector<1x256x32xf32>
    %c0_3 = arith.constant 0 : index
    %c0_4 = arith.constant 0 : index
    %c0_5 = arith.constant 0 : index
    %4 = vector.load %arg4[%c0_3, %c0_4, %c0_5] : memref<1x256x32xf32, #tpu.memory_space<vmem>>, vector<1x256x32xf32>
    %c0_6 = arith.constant 0 : index
    %c0_7 = arith.constant 0 : index
    %c0_8 = arith.constant 0 : index
    %5 = vector.load %arg5[%c0_6, %c0_7, %c0_8] : memref<1x256x33xf32, #tpu.memory_space<vmem>>, vector<1x256x33xf32>
    %cst = arith.constant dense<0.000000e+00> : vector<1x256x256xf32>
    %6 = tpu.matmul %3, %4, %cst {dimension_numbers = #tpu.dot_dimension_numbers<[2], [2], [1], [1], [0, 0, 0, 1, 1, 1], [0], [0]>} : vector<1x256x32xf32>, vector<1x256x32xf32>, vector<1x256x256xf32> -> vector<1x256x256xf32>
    %cst_9 = arith.constant dense<0xFF800000> : vector<1x256xf32>
    %7 = vector.multi_reduction <maximumf>, %6, %cst_9 [2] : vector<1x256x256xf32> to vector<1x256xf32>
    %8 = vector.shape_cast %7 : vector<1x256xf32> to vector<1x256x1xf32>
    %9 = vector.broadcast %8 : vector<1x256x1xf32> to vector<1x256x256xf32>
    %10 = arith.subf %6, %9 : vector<1x256x256xf32>
    %11 = math.exp %10 : vector<1x256x256xf32>
    %cst_10 = arith.constant dense<0.000000e+00> : vector<1x33x256xf32>
    %12 = tpu.matmul %5, %11, %cst_10 {dimension_numbers = #tpu.dot_dimension_numbers<[1], [2], [2], [1], [0, 0, 0, 2, 1, 1], [0], [0]>} : vector<1x256x33xf32>, vector<1x256x256xf32>, vector<1x33x256xf32> -> vector<1x33x256xf32>
    %13 = tpu.transpose %8, [0, 2, 1] : vector<1x256x1xf32> -> vector<1x1x256xf32>
    %c0_11 = arith.constant 0 : index
    %c0_12 = arith.constant 0 : index
    %c0_13 = arith.constant 0 : index
    %14 = vector.load %arg8[%c0_11, %c0_12, %c0_13] : memref<1x1x256xf32, #tpu.memory_space<vmem>>, vector<1x1x256xf32>
    %15 = arith.maximumf %14, %13 : vector<1x1x256xf32>
    %16 = arith.subf %14, %15 : vector<1x1x256xf32>
    %17 = math.exp %16 : vector<1x1x256xf32>
    %18 = arith.subf %13, %15 : vector<1x1x256xf32>
    %19 = math.exp %18 : vector<1x1x256xf32>
    %c0_14 = arith.constant 0 : index
    %c0_15 = arith.constant 0 : index
    %c0_16 = arith.constant 0 : index
    %20 = vector.load %arg9[%c0_14, %c0_15, %c0_16] : memref<1x1x256xf32, #tpu.memory_space<vmem>>, vector<1x1x256xf32>
    %21 = arith.mulf %17, %20 : vector<1x1x256xf32>
    %22 = vector.extract_strided_slice %12 {offsets = [0, 32, 0], sizes = [1, 1, 256], strides = [1, 1, 1]} : vector<1x33x256xf32> to vector<1x1x256xf32>
    %23 = arith.mulf %19, %22 : vector<1x1x256xf32>
    %24 = arith.addf %21, %23 : vector<1x1x256xf32>
    %c0_17 = arith.constant 0 : index
    %c0_18 = arith.constant 0 : index
    %c0_19 = arith.constant 0 : index
    %25 = vector.load %arg9[%c0_17, %c0_18, %c0_19] : memref<1x1x256xf32, #tpu.memory_space<vmem>>, vector<1x1x256xf32>
    tpu.vector_store %arg9[%c0_17, %c0_18, %c0_19], %24 {strides = array<i32>} : memref<1x1x256xf32, #tpu.memory_space<vmem>>, vector<1x1x256xf32>,
    %c0_20 = arith.constant 0 : index
    %c0_21 = arith.constant 0 : index
    %c0_22 = arith.constant 0 : index
    %26 = vector.load %arg10[%c0_20, %c0_21, %c0_22] : memref<1x32x256xf32, #tpu.memory_space<vmem>>, vector<1x32x256xf32>
    %27 = vector.broadcast %17 : vector<1x1x256xf32> to vector<1x32x256xf32>
    %28 = arith.mulf %27, %26 : vector<1x32x256xf32>
    %29 = vector.extract_strided_slice %12 {offsets = [0, 0, 0], sizes = [1, 32, 256], strides = [1, 1, 1]} : vector<1x33x256xf32> to vector<1x32x256xf32>
    %30 = vector.broadcast %19 : vector<1x1x256xf32> to vector<1x32x256xf32>
    %31 = arith.mulf %30, %29 : vector<1x32x256xf32>
    %32 = arith.addf %28, %31 : vector<1x32x256xf32>
    %c0_23 = arith.constant 0 : index
    %c0_24 = arith.constant 0 : index
    %c0_25 = arith.constant 0 : index
    %33 = vector.load %arg10[%c0_23, %c0_24, %c0_25] : memref<1x32x256xf32, #tpu.memory_space<vmem>>, vector<1x32x256xf32>
    tpu.vector_store %arg10[%c0_23, %c0_24, %c0_25], %32 {strides = array<i32>} : memref<1x32x256xf32, #tpu.memory_space<vmem>>, vector<1x32x256xf32>,
    %c0_26 = arith.constant 0 : index
    %c0_27 = arith.constant 0 : index
    %c0_28 = arith.constant 0 : index
    %34 = vector.load %arg8[%c0_26, %c0_27, %c0_28] : memref<1x1x256xf32, #tpu.memory_space<vmem>>, vector<1x1x256xf32>
    tpu.vector_store %arg8[%c0_26, %c0_27, %c0_28], %15 {strides = array<i32>} : memref<1x1x256xf32, #tpu.memory_space<vmem>>, vector<1x1x256xf32>,
    %c0_i32_29 = arith.constant 0 : i32
    %35 = arith.cmpi eq, %arg2, %c0_i32_29 : i32
    %36 = arith.extui %35 : i1 to i32
    %c0_i32_30 = arith.constant 0 : i32
    %37 = arith.cmpi ne, %36, %c0_i32_30 : i32
    scf.if %37 {
      %c0_31 = arith.constant 0 : index
      %c0_32 = arith.constant 0 : index
      %c0_33 = arith.constant 0 : index
      %38 = vector.load %arg9[%c0_31, %c0_32, %c0_33] : memref<1x1x256xf32, #tpu.memory_space<vmem>>, vector<1x1x256xf32>
      %39 = tpu.reciprocal %38 {approx = true} : vector<1x1x256xf32> -> vector<1x1x256xf32>
      %40 = arith.mulf %38, %39 : vector<1x1x256xf32>
      %cst_34 = arith.constant 2.000000e+00 : f32
      %41 = vector.broadcast %cst_34 : f32 to vector<1x1x256xf32>
      %42 = arith.subf %41, %40 : vector<1x1x256xf32>
      %43 = arith.mulf %39, %42 : vector<1x1x256xf32>
      %c0_35 = arith.constant 0 : index
      %c0_36 = arith.constant 0 : index
      %c0_37 = arith.constant 0 : index
      %44 = vector.load %arg10[%c0_35, %c0_36, %c0_37] : memref<1x32x256xf32, #tpu.memory_space<vmem>>, vector<1x32x256xf32>
      %45 = vector.broadcast %43 : vector<1x1x256xf32> to vector<1x32x256xf32>
      %46 = arith.mulf %44, %45 : vector<1x32x256xf32>
      %c0_38 = arith.constant 0 : index
      %c0_39 = arith.constant 0 : index
      %c0_40 = arith.constant 0 : index
      %47 = vector.load %arg6[%c0_38, %c0_39, %c0_40] : memref<1x32x256xf32, #tpu.memory_space<vmem>>, vector<1x32x256xf32>
      tpu.vector_store %arg6[%c0_38, %c0_39, %c0_40], %46 {strides = array<i32>} : memref<1x32x256xf32, #tpu.memory_space<vmem>>, vector<1x32x256xf32>,
    } else {
    }
    return
  }
  func.func @transform_0(%arg0: i32, %arg1: i32, %arg2: i32) -> (i32, i32, i32) {
    %c0_i32 = arith.constant 0 : i32
    %c0_i32_0 = arith.constant 0 : i32
    return %arg0, %arg1, %c0_i32 : i32, i32, i32
  }
  func.func @transform_1(%arg0: i32, %arg1: i32, %arg2: i32) -> (i32, i32, i32) {
    %c0_i32 = arith.constant 0 : i32
    %c0_i32_0 = arith.constant 0 : i32
    return %arg0, %arg2, %c0_i32 : i32, i32, i32
  }
  func.func @transform_2(%arg0: i32, %arg1: i32, %arg2: i32) -> (i32, i32, i32) {
    %c0_i32 = arith.constant 0 : i32
    %c0_i32_0 = arith.constant 0 : i32
    return %arg0, %arg2, %c0_i32 : i32, i32, i32
  }
  func.func @transform_3(%arg0: i32, %arg1: i32, %arg2: i32) -> (i32, i32, i32) {
    %c0_i32 = arith.constant 0 : i32
    %c0_i32_0 = arith.constant 0 : i32
    return %arg0, %c0_i32, %arg1 : i32, i32, i32
  }
}

</mosaic_0001>

<bundles_post_ra>
// kernel: tpu_custom_call.1
= control target key start
LH: loop header
LB: loop body
LE: loop exit
PB: predicated region body
PF: predicated region fallthrough
CT: control target
= control target key end

     0   :  { %8 = vsyncpa [#allocation7], 0  ;;  %s3109_s0 = inlined_call_operand.vmem [shape: f32[2,256,32], index: 0, kind: input, shape index: {}]   ;;  %s3110_s1 = inlined_call_operand.vmem [shape: f32[2,256,32], index: 1, kind: input, shape index: {}]   ;;  %s3111_s2 = inlined_call_operand.vmem [shape: f32[2,256,33], index: 2, kind: input, shape index: {}]   ;;  %s3112_s3 = inlined_call_operand.hbm [shape: f32[2,32,256], index: 3, kind: output, shape index: {}]  }
   0x1   :  { %10 = vsyncpa [#allocation7 + $0x1], 0  ;;  %s2294_s12 = smov 0   ;;  %s2296_s13 = smov 0  }
   0x2   :  { %s2298_s14 = smov 0   ;;  %s2300_s15 = smov 0  }
   0x3   :  { %s2302_s16 = smov 0   ;;  %s2304_s17 = smov 0  }
   0x4 LB: > { %s1756_s18 = sadd.s32 4294967295, %s2266_s17   ;;  %s1757_s19 = sadd.s32 4294967294, %s2266_s17   ;;  %s2266_s17 = sphi %s2304_s17, %s16_s17   ;;  %s2262_s16 = sphi %s2302_s16, %s3181_s16   ;;  %s2258_s15 = sphi %s2300_s15, %s3180_s15   ;;  %s2254_s14 = sphi %s2298_s14, %s3179_s14   ;;  %s2250_s13 = sphi %s2296_s13, %s3178_s13   ;;  %s2246_s12 = sphi %s2294_s12, %s3177_s12  }
   0x5   : > { %s35_s20 = sadd.s32 1, %s2262_s16  ;;  %s128_s21 = sadd.s32 1, %s2254_s14 }
   0x6   : > { %p37_p0 = scmp.ge.s32.totalorder %s35_s20, 2  ;;  %p138_p1 = scmp.ne.s32.totalorder %s2254_s14, %s2250_s13 }
   0x7   : > { %p139_p2 = scmp.eq.s32.totalorder %s1756_s18, 1  ;;  %p144_p3 = scmp.ne.s32.totalorder %s2250_s13, %s2246_s12 }
   0x8   : > { %s3183_s20 = smov (%p37_p0, %s35_s20), 0  ;;  %p145_p5 = scmp.eq.s32.totalorder %s1757_s19, 1 }
   0x9   : > { %p2334_p4 = por %p139_p2, %p138_p1  ;;  %s123_s23 = ssub.s32 %s2262_s16, %s3183_s20 }
   0xa   : > { %p1760_p6 = scmp.ge.s32.totalorder %s2266_s17, 1  ;;  %p126_p7 = scmp.eq.s32.totalorder %s123_s23, 0 }
   0xb   : > { %p2341_p8 = por %p145_p5, %p144_p3  ;;  %p202_p9 = scmp.lt.s32.totalorder %s2266_s17, 3 }
   0xc   : > { %s2347_s25 = scalar_select %p126_p7, %s2254_s14, %s128_s21  }
   0xd   : > { %p203_p10 = pnand %p1760_p6, %p202_p9 }
   0xf   : > { %206 = sbr.rel (%p203_p10) target bundleno = 907 (0x38b), region = 32 }
  0x14   : > { %p249_p11 = scmp.lt.s32.totalorder %s2258_s15, 1  ;;  %vm347_vm0 = vcmask 261120   ;;  %s245_s10 = sand.u32 1, %s2250_s13  }
  0x15   : > { %s1761_s11 = sshll.u32 %s245_s10, 6  ;;  %s1840_s18 = sshll.u32 %s2258_s15, 10 }
  0x16   : > { %s250_s26 = scalar_select %p249_p11, %s2258_s15, 1 }
  0x17   : > { %s247_s19 = scalar_lea.vmem [#allocation6], %s1761_s11  ;;  %s3064_s15 = scalar_lea.sflag [#allocation7], %s245_s10 }
  0x18   : > { %s2351_s27 = sshll.u32 %s250_s26, 8  ;;  %s1638_s21 = sshll.u32 %s247_s19, 4  ;;  %s3062_s21 = int_to_ptr.vmem [resolvable:$true] %s1638_s21 }
  0x19   : > { %s2357_s30 = scalar_lea.vmem %s3110_s1, %s2351_s27  ;;  %s2372_s6 = scalar_lea.vmem %s3109_s0, %s2351_s27 }
  0x1a   : > { %v457_v0 = vld [vmem:[%s2357_s30 + $0xf8] sm:$0xff]  ;;  %v456_v2 = vld [vmem:[%s2357_s30 + $0xf0] sm:$0xff]  ;;  %v455_v4 = vld [vmem:[%s2357_s30 + $0xe8] sm:$0xff]  ;;  %s2757_s9 = scalar_lea.vmem %s3111_s2, %s2351_s27  ;;  %s3060_s27 = scalar_lea.hbm %s3112_s3, %s1840_s18 }
  0x1b   : > { %v441_v1 = vld [vmem:[%s2357_s30 + $0x78] sm:$0xff]  ;;  %1841 = vmatprep.subr.msk.mxu0 %vm347_vm0, %v457_v0  ;;  %v440_v3 = vld [vmem:[%s2357_s30 + $0x70] sm:$0xff]  ;;  %v439_v5 = vld [vmem:[%s2357_s30 + $0x68] sm:$0xff]  ;;  %s2190_s28 = scalar_lea.vmem %s3062_s21, 1024  ;;  %s2271_s29 = smov [#allocation6]  }
  0x1c   : > { %1842 = vmatpush3.xpose.msk.msra.mxu0 %vm347_vm0, %v441_v1  ;;  %v454_v6 = vld [vmem:[%s2357_s30 + $0xe0] sm:$0xff]  ;;  %v453_v8 = vld [vmem:[%s2357_s30 + $0xd8] sm:$0xff]  ;;  %v284_v11 = vld [vmem:[%s2372_s6 + $0x8] sm:$0xff]  ;;  %p2191_p12 = scmp.ne.s32.totalorder %s3062_s21, %s2190_s28 }
  0x1d   : > { %1843 = vmatprep.subr.msk.mxu0 %vm347_vm0, %v456_v2  ;;  %v438_v7 = vld [vmem:[%s2357_s30 + $0x60] sm:$0xff]  ;;  %v285_v12 = vld [vmem:[%s2372_s6 + $0x10] sm:$0xff]  ;;  %v286_v13 = vld [vmem:[%s2372_s6 + $0x18] sm:$0xff]  ;;  %v316_v14 = vmul.f32 0.35355338, %v284_v11 }
  0x1e   : > { %v283_v9 = vld [vmem:[%s2372_s6] sm:$0xff]  ;;  %v317_v15 = vmul.f32 0.35355338, %v285_v12  ;;  %v318_v16 = vmul.f32 0.35355338, %v286_v13  ;;  %v437_v17 = vld [vmem:[%s2357_s30 + $0x58] sm:$0xff]  ;;  %p2192_p13 = pnand %p2191_p12, %p2334_p4 }
  0x1f   : > { %v315_v10 = vmul.f32 0.35355338, %v283_v9  ;;  %v287_v18 = vld [vmem:[%s2372_s6 + $0x20] sm:$0xff]  ;;  %v288_v19 = vld [vmem:[%s2372_s6 + $0x28] sm:$0xff]  ;;  %v289_v20 = vld [vmem:[%s2372_s6 + $0x30] sm:$0xff]  ;;  %349 = vst.msk [vmem:[#allocation2 + $0x8] sm:$0xff] %vm347_vm0, %v316_v14 }
  0x20   : > { %1844 = vmatpush3.xpose.msk.msra.mxu0 %vm347_vm0, %v440_v3  ;;  %v452_v21 = vld [vmem:[%s2357_s30 + $0xd0] sm:$0xff]  ;;  %350 = vst.msk [vmem:[#allocation2 + $0x10] sm:$0xff] %vm347_vm0, %v317_v15  ;;  %351 = vst.msk [vmem:[#allocation2 + $0x18] sm:$0xff] %vm347_vm0, %v318_v16  ;;  %v319_v22 = vmul.f32 0.35355338, %v287_v18  ;;  %v290_v25 = vld [vmem:[%s2372_s6 + $0x38] sm:$0xff]  ;;  %p2193_p0 = pneg %p2192_p13 }
  0x21   : > { %1845 = vmatprep.subr.msk.mxu0 %vm347_vm0, %v455_v4  ;;  %348 = vst.msk [vmem:[#allocation2] sm:$0xff] %vm347_vm0, %v315_v10  ;;  %v320_v23 = vmul.f32 0.35355338, %v288_v19  ;;  %v321_v24 = vmul.f32 0.35355338, %v289_v20  ;;  %v291_v26 = vld [vmem:[%s2372_s6 + $0x40] sm:$0xff] }
  0x22   : > { %v292_v27 = vld [vmem:[%s2372_s6 + $0x48] sm:$0xff]  ;;  %352 = vst.msk [vmem:[#allocation2 + $0x20] sm:$0xff] %vm347_vm0, %v319_v22  ;;  %v322_v28 = vmul.f32 0.35355338, %v290_v25  ;;  %v323_v29 = vmul.f32 0.35355338, %v291_v26 }
  0x23   : > { %353 = vst.msk [vmem:[#allocation2 + $0x28] sm:$0xff] %vm347_vm0, %v320_v23  ;;  %354 = vst.msk [vmem:[#allocation2 + $0x30] sm:$0xff] %vm347_vm0, %v321_v24  ;;  %v324_v30 = vmul.f32 0.35355338, %v292_v27  ;;  %v436_v31 = vld [vmem:[%s2357_s30 + $0x50] sm:$0xff]  ;;  %v294_v33 = vld [vmem:[%s2372_s6 + $0x58] sm:$0xff] }
  0x24   : > { %1846 = vmatpush3.xpose.msk.msra.mxu0 %vm347_vm0, %v439_v5  ;;  %v293_v32 = vld [vmem:[%s2372_s6 + $0x50] sm:$0xff]  ;;  %v295_v34 = vld [vmem:[%s2372_s6 + $0x60] sm:$0xff]  ;;  %v451_v35 = vld [vmem:[%s2357_s30 + $0xc8] sm:$0xff]  ;;  %355 = vst.msk [vmem:[#allocation2 + $0x38] sm:$0xff] %vm347_vm0, %v322_v28  ;;  %v326_v37 = vmul.f32 0.35355338, %v294_v33 }
  0x25   : > { %1847 = vmatprep.subr.msk.mxu0 %vm347_vm0, %v454_v6  ;;  %356 = vst.msk [vmem:[#allocation2 + $0x40] sm:$0xff] %vm347_vm0, %v323_v29  ;;  %357 = vst.msk [vmem:[#allocation2 + $0x48] sm:$0xff] %vm347_vm0, %v324_v30  ;;  %v325_v36 = vmul.f32 0.35355338, %v293_v32  ;;  %v327_v38 = vmul.f32 0.35355338, %v295_v34 }
  0x26   : > { %v296_v39 = vld [vmem:[%s2372_s6 + $0x68] sm:$0xff]  ;;  %v297_v40 = vld [vmem:[%s2372_s6 + $0x70] sm:$0xff]  ;;  %v298_v41 = vld [vmem:[%s2372_s6 + $0x78] sm:$0xff]  ;;  %359 = vst.msk [vmem:[#allocation2 + $0x58] sm:$0xff] %vm347_vm0, %v326_v37 }
  0x27   : > { %358 = vst.msk [vmem:[#allocation2 + $0x50] sm:$0xff] %vm347_vm0, %v325_v36  ;;  %360 = vst.msk [vmem:[#allocation2 + $0x60] sm:$0xff] %vm347_vm0, %v327_v38  ;;  %v328_v43 = vmul.f32 0.35355338, %v296_v39  ;;  %v329_v44 = vmul.f32 0.35355338, %v297_v40 }
  0x28   : > { %1848 = vmatpush3.xpose.msk.msra.mxu0 %vm347_vm0, %v438_v7  ;;  %v2415_v42 = vld [vmem:[#allocation2] sm:$0xff]  ;;  %v330_v46 = vmul.f32 0.35355338, %v298_v41  ;;  %v300_v48 = vld [vmem:[%s2372_s6 + $0x88] sm:$0xff]  ;;  %v301_v49 = vld [vmem:[%s2372_s6 + $0x90] sm:$0xff] }
  0x29   : > { %1849 = vmatprep.subr.msk.mxu0 %vm347_vm0, %v453_v8  ;;  %v299_v45 = vld [vmem:[%s2372_s6 + $0x80] sm:$0xff]  ;;  %1873 = vmatprep.mubr.msk.f32.mxu0 %vm347_vm0, %v2415_v42  ;;  %361 = vst.msk [vmem:[#allocation2 + $0x68] sm:$0xff] %vm347_vm0, %v328_v43  ;;  %362 = vst.msk [vmem:[#allocation2 + $0x70] sm:$0xff] %vm347_vm0, %v329_v44  ;;  %v302_v50 = vld [vmem:[%s2372_s6 + $0x98] sm:$0xff]  ;;  %v332_v53 = vmul.f32 0.35355338, %v300_v48 }
  0x2a   : > { %v331_v47 = vmul.f32 0.35355338, %v299_v45  ;;  %v435_v51 = vld [vmem:[%s2357_s30 + $0x48] sm:$0xff]  ;;  %v450_v52 = vld [vmem:[%s2357_s30 + $0xc0] sm:$0xff]  ;;  %363 = vst.msk [vmem:[#allocation2 + $0x78] sm:$0xff] %vm347_vm0, %v330_v46  ;;  %v305_v60 = vld [vmem:[%s2372_s6 + $0xb0] sm:$0xff] }
  0x2b   : > { %v333_v54 = vmul.f32 0.35355338, %v301_v49  ;;  %v334_v55 = vmul.f32 0.35355338, %v302_v50  ;;  %v303_v56 = vld [vmem:[%s2372_s6 + $0xa0] sm:$0xff]  ;;  %v304_v57 = vld [vmem:[%s2372_s6 + $0xa8] sm:$0xff] }
  0x2c   : > { %1850 = vmatpush3.xpose.msk.msra.mxu0 %vm347_vm0, %v437_v17  ;;  %364 = vst.msk [vmem:[#allocation2 + $0x80] sm:$0xff] %vm347_vm0, %v331_v47  ;;  %365 = vst.msk [vmem:[#allocation2 + $0x88] sm:$0xff] %vm347_vm0, %v332_v53  ;;  %v335_v58 = vmul.f32 0.35355338, %v303_v56  ;;  %v336_v59 = vmul.f32 0.35355338, %v304_v57 }
  0x2d   : > { %1851 = vmatprep.subr.msk.mxu0 %vm347_vm0, %v452_v21  ;;  %366 = vst.msk [vmem:[#allocation2 + $0x90] sm:$0xff] %vm347_vm0, %v333_v54  ;;  %367 = vst.msk [vmem:[#allocation2 + $0x98] sm:$0xff] %vm347_vm0, %v334_v55  ;;  %v306_v61 = vld [vmem:[%s2372_s6 + $0xb8] sm:$0xff]  ;;  %v307_v62 = vld [vmem:[%s2372_s6 + $0xc0] sm:$0xff]  ;;  %v337_v0 = vmul.f32 0.35355338, %v305_v60 }
  0x2e   : > { %v434_v63 = vld [vmem:[%s2357_s30 + $0x40] sm:$0xff]  ;;  %368 = vst.msk [vmem:[#allocation2 + $0xa0] sm:$0xff] %vm347_vm0, %v335_v58  ;;  %v449_v1 = vld [vmem:[%s2357_s30 + $0xb8] sm:$0xff]  ;;  %369 = vst.msk [vmem:[#allocation2 + $0xa8] sm:$0xff] %vm347_vm0, %v336_v59  ;;  %v338_v2 = vmul.f32 0.35355338, %v306_v61 }
  0x2f   : > { %v339_v3 = vmul.f32 0.35355338, %v307_v62  ;;  %v308_v4 = vld [vmem:[%s2372_s6 + $0xc8] sm:$0xff]  ;;  %370 = vst.msk [vmem:[#allocation2 + $0xb0] sm:$0xff] %vm347_vm0, %v337_v0  ;;  %v309_v6 = vld [vmem:[%s2372_s6 + $0xd0] sm:$0xff]  ;;  %v433_v8 = vld [vmem:[%s2357_s30 + $0x38] sm:$0xff] }
  0x30   : > { %1852 = vmatpush3.xpose.msk.msra.mxu0 %vm347_vm0, %v436_v31  ;;  %v340_v5 = vmul.f32 0.35355338, %v308_v4  ;;  %371 = vst.msk [vmem:[#allocation2 + $0xb8] sm:$0xff] %vm347_vm0, %v338_v2  ;;  %v341_v7 = vmul.f32 0.35355338, %v309_v6  ;;  %v448_v9 = vld [vmem:[%s2357_s30 + $0xb0] sm:$0xff] }
  0x31   : > { %1853 = vmatprep.subr.msk.mxu0 %vm347_vm0, %v451_v35  ;;  %372 = vst.msk [vmem:[#allocation2 + $0xc0] sm:$0xff] %vm347_vm0, %v339_v3  ;;  %v310_v10 = vld [vmem:[%s2372_s6 + $0xd8] sm:$0xff]  ;;  %v432_v12 = vld [vmem:[%s2357_s30 + $0x30] sm:$0xff]  ;;  %v447_v13 = vld [vmem:[%s2357_s30 + $0xa8] sm:$0xff] }
  0x32   : > { %373 = vst.msk [vmem:[#allocation2 + $0xc8] sm:$0xff] %vm347_vm0, %v340_v5  ;;  %374 = vst.msk [vmem:[#allocation2 + $0xd0] sm:$0xff] %vm347_vm0, %v341_v7  ;;  %v342_v11 = vmul.f32 0.35355338, %v310_v10  ;;  %v311_v14 = vld [vmem:[%s2372_s6 + $0xe0] sm:$0xff]  ;;  %v431_v16 = vld [vmem:[%s2357_s30 + $0x28] sm:$0xff] }
  0x33   : > { %v343_v15 = vmul.f32 0.35355338, %v311_v14  ;;  %v446_v17 = vld [vmem:[%s2357_s30 + $0xa0] sm:$0xff]  ;;  %v312_v18 = vld [vmem:[%s2372_s6 + $0xe8] sm:$0xff]  ;;  %v445_v21 = vld [vmem:[%s2357_s30 + $0x98] sm:$0xff] }
  0x34   : > { %1854 = vmatpush3.xpose.msk.msra.mxu0 %vm347_vm0, %v435_v51  ;;  %375 = vst.msk [vmem:[#allocation2 + $0xd8] sm:$0xff] %vm347_vm0, %v342_v11  ;;  %v344_v19 = vmul.f32 0.35355338, %v312_v18  ;;  %v430_v20 = vld [vmem:[%s2357_s30 + $0x20] sm:$0xff]  ;;  %v313_v22 = vld [vmem:[%s2372_s6 + $0xf0] sm:$0xff]  ;;  %v429_v24 = vld [vmem:[%s2357_s30 + $0x18] sm:$0xff] }
  0x35   : > { %1855 = vmatprep.subr.msk.mxu0 %vm347_vm0, %v450_v52  ;;  %376 = vst.msk [vmem:[#allocation2 + $0xe0] sm:$0xff] %vm347_vm0, %v343_v15  ;;  %v345_v23 = vmul.f32 0.35355338, %v313_v22  ;;  %v444_v25 = vld [vmem:[%s2357_s30 + $0x90] sm:$0xff]  ;;  %v314_v27 = vld [vmem:[%s2372_s6 + $0xf8] sm:$0xff]  ;;  %v443_v28 = vld [vmem:[%s2357_s30 + $0x88] sm:$0xff] }
  0x36   : > { %377 = vst.msk [vmem:[#allocation2 + $0xe8] sm:$0xff] %vm347_vm0, %v344_v19  ;;  %v428_v26 = vld [vmem:[%s2357_s30 + $0x10] sm:$0xff]  ;;  %v346_v29 = vmul.f32 0.35355338, %v314_v27  ;;  %v427_v30 = vld [vmem:[%s2357_s30 + $0x8] sm:$0xff]  ;;  %v442_v31 = vld [vmem:[%s2357_s30 + $0x80] sm:$0xff] }
  0x37   : > { %378 = vst.msk [vmem:[#allocation2 + $0xf0] sm:$0xff] %vm347_vm0, %v345_v23  ;;  %v426_v32 = vld [vmem:[%s2357_s30] sm:$0xff]  ;;  %v395_v33 = vld [vmem:[#allocation2 + $0x8] sm:$0xff]  ;;  %v396_v34 = vld [vmem:[#allocation2 + $0x10] sm:$0xff]  ;;  %s2194_s30 = sshll.u32 %s2271_s29, 4  ;;  %s2195_s30 = int_to_ptr.vmem [resolvable:$false] %s2194_s30 }
  0x38   : > { %1856 = vmatpush3.xpose.msk.msra.mxu0 %vm347_vm0, %v434_v63  ;;  %379 = vst.msk [vmem:[#allocation2 + $0xf8] sm:$0xff] %vm347_vm0, %v346_v29  ;;  %v397_v35 = vld [vmem:[#allocation2 + $0x18] sm:$0xff]  ;;  %v398_v36 = vld [vmem:[#allocation2 + $0x20] sm:$0xff]  ;;  %v399_v37 = vld [vmem:[#allocation2 + $0x28] sm:$0xff]  ;;  %s2196_s4 = scalar_lea.vmem %s2195_s30, 2048  ;;  %p2197_p1 = scmp.lt.s32.totalorder %s3062_s21, %s2195_s30 }
  0x39   : > { %1857 = vmatprep.subr.msk.mxu0 %vm347_vm0, %v449_v1  ;;  %v400_v38 = vld [vmem:[#allocation2 + $0x30] sm:$0xff]  ;;  %v401_v39 = vld [vmem:[#allocation2 + $0x38] sm:$0xff]  ;;  %v402_v40 = vld [vmem:[#allocation2 + $0x40] sm:$0xff]  ;;  %p2198_p2 = scmp.lt.s32.totalorder %s2196_s4, %s2190_s28 }
  0x3a   : > { %v403_v41 = vld [vmem:[#allocation2 + $0x48] sm:$0xff]  ;;  %v405_v43 = vld [vmem:[#allocation2 + $0x58] sm:$0xff]  ;;  %v406_v44 = vld [vmem:[#allocation2 + $0x60] sm:$0xff] }
  0x3b   : > { %v407_v45 = vld [vmem:[#allocation2 + $0x68] sm:$0xff]  ;;  %v408_v46 = vld [vmem:[#allocation2 + $0x70] sm:$0xff]  ;;  %v409_v47 = vld [vmem:[#allocation2 + $0x78] sm:$0xff]  ;;  %p2199_p3 = por %p2198_p2, %p2197_p1 }
  0x3c   : > { %1858 = vmatpush3.xpose.msk.msra.mxu0 %vm347_vm0, %v433_v8  ;;  %v410_v48 = vld [vmem:[#allocation2 + $0x80] sm:$0xff]  ;;  %v411_v49 = vld [vmem:[#allocation2 + $0x88] sm:$0xff]  ;;  %v412_v50 = vld [vmem:[#allocation2 + $0x90] sm:$0xff] }
  0x3d   : > { %1859 = vmatprep.subr.msk.mxu0 %vm347_vm0, %v448_v9  ;;  %v413_v51 = vld [vmem:[#allocation2 + $0x98] sm:$0xff]  ;;  %v414_v52 = vld [vmem:[#allocation2 + $0xa0] sm:$0xff]  ;;  %v415_v53 = vld [vmem:[#allocation2 + $0xa8] sm:$0xff]  ;;  %p2200_p5 = pnand %p2199_p3, %p2193_p0 }
  0x3e   : > { %v416_v54 = vld [vmem:[#allocation2 + $0xb0] sm:$0xff]  ;;  %v417_v55 = vld [vmem:[#allocation2 + $0xb8] sm:$0xff]  ;;  %v418_v56 = vld [vmem:[#allocation2 + $0xc0] sm:$0xff] }
  0x3f   : > { %v419_v57 = vld [vmem:[#allocation2 + $0xc8] sm:$0xff]  ;;  %v420_v58 = vld [vmem:[#allocation2 + $0xd0] sm:$0xff]  ;;  %v421_v59 = vld [vmem:[#allocation2 + $0xd8] sm:$0xff] }
  0x40   : > { %1860 = vmatpush3.xpose.msk.msra.mxu0 %vm347_vm0, %v432_v12  ;;  %v422_v60 = vld [vmem:[#allocation2 + $0xe0] sm:$0xff]  ;;  %v423_v61 = vld [vmem:[#allocation2 + $0xe8] sm:$0xff]  ;;  %v424_v62 = vld [vmem:[#allocation2 + $0xf0] sm:$0xff] }
  0x41   : > { %1861 = vmatprep.subr.msk.mxu0 %vm347_vm0, %v447_v13  ;;  %v425_v63 = vld [vmem:[#allocation2 + $0xf8] sm:$0xff] }
  0x44   : > { %1862 = vmatpush3.xpose.msk.msra.mxu0 %vm347_vm0, %v431_v16 }
  0x45   : > { %1863 = vmatprep.subr.msk.mxu0 %vm347_vm0, %v446_v17 }
  0x48   : > { %1864 = vmatpush3.xpose.msk.msra.mxu0 %vm347_vm0, %v430_v20 }
  0x49   : > { %1865 = vmatprep.subr.msk.mxu0 %vm347_vm0, %v445_v21 }
  0x4c   : > { %1866 = vmatpush3.xpose.msk.msra.mxu0 %vm347_vm0, %v429_v24 }
  0x4d   : > { %1867 = vmatprep.subr.msk.mxu0 %vm347_vm0, %v444_v25 }
  0x50   : > { %1868 = vmatpush3.xpose.msk.msra.mxu0 %vm347_vm0, %v428_v26 }
  0x51   : > { %1869 = vmatprep.subr.msk.mxu0 %vm347_vm0, %v443_v28 }
  0x54   : > { %1870 = vmatpush3.xpose.msk.msra.mxu0 %vm347_vm0, %v427_v30 }
  0x55   : > { %1871 = vmatprep.subr.msk.mxu0 %vm347_vm0, %v442_v31 }
  0x58   : > { %1872 = vmatpush3.xpose.msk.msra.mxu0 %vm347_vm0, %v426_v32 }
  0x5b   : > { %1874 = vmatmul.mubr.msk.f32.vlgmr.msra.gmra.mxu0 %vm347_vm0, %v2415_v42  ;;  %v404_v42 = vld [vmem:[#allocation2 + $0x50] sm:$0xff] }
  0x5c   : > { %1875 = vmatprep.mubr.msk.f32.mxu0 %vm347_vm0, %v395_v33 }
  0x5f   : > { %1876 = vmatmul.mubr.msk.f32.gmra.mxu0 %vm347_vm0, %v395_v33 }
  0x60   : > { %1877 = vmatprep.mubr.msk.f32.mxu0 %vm347_vm0, %v396_v34 }
  0x63   : > { %1878 = vmatmul.mubr.msk.f32.gmra.mxu0 %vm347_vm0, %v396_v34 }
  0x64   : > { %1879 = vmatprep.mubr.msk.f32.mxu0 %vm347_vm0, %v397_v35 }
  0x67   : > { %1880 = vmatmul.mubr.msk.f32.gmra.mxu0 %vm347_vm0, %v397_v35 }
  0x68   : > { %1881 = vmatprep.mubr.msk.f32.mxu0 %vm347_vm0, %v398_v36 }
  0x6b   : > { %1882 = vmatmul.mubr.msk.f32.gmra.mxu0 %vm347_vm0, %v398_v36 }
  0x6c   : > { %1883 = vmatprep.mubr.msk.f32.mxu0 %vm347_vm0, %v399_v37 }
  0x6f   : > { %1884 = vmatmul.mubr.msk.f32.gmra.mxu0 %vm347_vm0, %v399_v37 }
  0x70   : > { %1885 = vmatprep.mubr.msk.f32.mxu0 %vm347_vm0, %v400_v38 }
  0x73   : > { %1886 = vmatmul.mubr.msk.f32.gmra.mxu0 %vm347_vm0, %v400_v38 }
  0x74   : > { %1887 = vmatprep.mubr.msk.f32.mxu0 %vm347_vm0, %v401_v39 }
  0x77   : > { %1888 = vmatmul.mubr.msk.f32.gmra.mxu0 %vm347_vm0, %v401_v39 }
  0x78   : > { %1889 = vmatprep.mubr.msk.f32.mxu0 %vm347_vm0, %v402_v40 }
  0x7b   : > { %1890 = vmatmul.mubr.msk.f32.gmra.mxu0 %vm347_vm0, %v402_v40 }
  0x7c   : > { %1891 = vmatprep.mubr.msk.f32.mxu0 %vm347_vm0, %v403_v41 }
  0x7f   : > { %1892 = vmatmul.mubr.msk.f32.gmra.mxu0 %vm347_vm0, %v403_v41 }
  0x80   : > { %1893 = vmatprep.mubr.msk.f32.mxu0 %vm347_vm0, %v404_v42 }
  0x83   : > { %1894 = vmatmul.mubr.msk.f32.gmra.mxu0 %vm347_vm0, %v404_v42 }
  0x84   : > { %1895 = vmatprep.mubr.msk.f32.mxu0 %vm347_vm0, %v405_v43 }
  0x87   : > { %1896 = vmatmul.mubr.msk.f32.gmra.mxu0 %vm347_vm0, %v405_v43 }
  0x88   : > { %1897 = vmatprep.mubr.msk.f32.mxu0 %vm347_vm0, %v406_v44 }
  0x8b   : > { %1898 = vmatmul.mubr.msk.f32.gmra.mxu0 %vm347_vm0, %v406_v44 }
  0x8c   : > { %1899 = vmatprep.mubr.msk.f32.mxu0 %vm347_vm0, %v407_v45 }
  0x8f   : > { %1900 = vmatmul.mubr.msk.f32.gmra.mxu0 %vm347_vm0, %v407_v45 }
  0x90   : > { %1901 = vmatprep.mubr.msk.f32.mxu0 %vm347_vm0, %v408_v46 }
  0x93   : > { %1902 = vmatmul.mubr.msk.f32.gmra.mxu0 %vm347_vm0, %v408_v46 }
  0x94   : > { %1903 = vmatprep.mubr.msk.f32.mxu0 %vm347_vm0, %v409_v47 }
  0x97   : > { %1904 = vmatmul.mubr.msk.f32.gmra.mxu0 %vm347_vm0, %v409_v47 }
  0x98   : > { %1905 = vmatprep.mubr.msk.f32.mxu0 %vm347_vm0, %v410_v48 }
  0x9b   : > { %1906 = vmatmul.mubr.msk.f32.gmra.mxu0 %vm347_vm0, %v410_v48 }
  0x9c   : > { %1907 = vmatprep.mubr.msk.f32.mxu0 %vm347_vm0, %v411_v49 }
  0x9f   : > { %1908 = vmatmul.mubr.msk.f32.gmra.mxu0 %vm347_vm0, %v411_v49 }
  0xa0   : > { %1909 = vmatprep.mubr.msk.f32.mxu0 %vm347_vm0, %v412_v50 }
  0xa3   : > { %1910 = vmatmul.mubr.msk.f32.gmra.mxu0 %vm347_vm0, %v412_v50 }
  0xa4   : > { %1911 = vmatprep.mubr.msk.f32.mxu0 %vm347_vm0, %v413_v51 }
  0xa7   : > { %1912 = vmatmul.mubr.msk.f32.gmra.mxu0 %vm347_vm0, %v413_v51 }
  0xa8   : > { %1913 = vmatprep.mubr.msk.f32.mxu0 %vm347_vm0, %v414_v52 }
  0xab   : > { %1914 = vmatmul.mubr.msk.f32.gmra.mxu0 %vm347_vm0, %v414_v52 }
  0xac   : > { %1915 = vmatprep.mubr.msk.f32.mxu0 %vm347_vm0, %v415_v53 }
  0xaf   : > { %1916 = vmatmul.mubr.msk.f32.gmra.mxu0 %vm347_vm0, %v415_v53 }
  0xb0   : > { %1917 = vmatprep.mubr.msk.f32.mxu0 %vm347_vm0, %v416_v54 }
  0xb3   : > { %1918 = vmatmul.mubr.msk.f32.gmra.mxu0 %vm347_vm0, %v416_v54 }
  0xb4   : > { %1919 = vmatprep.mubr.msk.f32.mxu0 %vm347_vm0, %v417_v55 }
  0xb7   : > { %1920 = vmatmul.mubr.msk.f32.gmra.mxu0 %vm347_vm0, %v417_v55 }
  0xb8   : > { %1921 = vmatprep.mubr.msk.f32.mxu0 %vm347_vm0, %v418_v56 }
  0xbb   : > { %1922 = vmatmul.mubr.msk.f32.gmra.mxu0 %vm347_vm0, %v418_v56 }
  0xbc   : > { %1923 = vmatprep.mubr.msk.f32.mxu0 %vm347_vm0, %v419_v57 }
  0xbf   : > { %1924 = vmatmul.mubr.msk.f32.gmra.mxu0 %vm347_vm0, %v419_v57 }
  0xc0   : > { %1925 = vmatprep.mubr.msk.f32.mxu0 %vm347_vm0, %v420_v58 }
  0xc3   : > { %1926 = vmatmul.mubr.msk.f32.gmra.mxu0 %vm347_vm0, %v420_v58 }
  0xc4   : > { %1927 = vmatprep.mubr.msk.f32.mxu0 %vm347_vm0, %v421_v59 }
  0xc7   : > { %1928 = vmatmul.mubr.msk.f32.gmra.mxu0 %vm347_vm0, %v421_v59 }
  0xc8   : > { %1929 = vmatprep.mubr.msk.f32.mxu0 %vm347_vm0, %v422_v60 }
  0xcb   : > { %1930 = vmatmul.mubr.msk.f32.gmra.mxu0 %vm347_vm0, %v422_v60 }
  0xcc   : > { %1931 = vmatprep.mubr.msk.f32.mxu0 %vm347_vm0, %v423_v61 }
  0xcf   : > { %1932 = vmatmul.mubr.msk.f32.gmra.mxu0 %vm347_vm0, %v423_v61 }
  0xd0   : > { %1933 = vmatprep.mubr.msk.f32.mxu0 %vm347_vm0, %v424_v62 }
  0xd3   : > { %1934 = vmatmul.mubr.msk.f32.gmra.mxu0 %vm347_vm0, %v424_v62 }
  0xd4   : > { %1935 = vmatprep.mubr.msk.f32.mxu0 %vm347_vm0, %v425_v63 }
  0xd7   : > { %1936 = vmatmul.mubr.msk.f32.gmra.mxu0 %vm347_vm0, %v425_v63 }
 0x11b   : > { %v2561_v0 = vpop.f32.mrf.mxu0 }
 0x11c   : > { %3135 = vst [vmem:[#allocation9_spill] sm:$0xff] %v2561_v0 }
 0x11d   : > { %v2563_v1 = vpop.f32.mrf.mxu0 }
 0x11e   : > { %3136 = vst [vmem:[#allocation10_spill] sm:$0xff] %v2563_v1  ;;  %v940_v54 = vmax.f32 %v2561_v0, %v2563_v1 }
 0x11f   : > { %v2565_v2 = vpop.f32.mrf.mxu0 }
 0x120   : > { %3137 = vst [vmem:[#allocation11_spill] sm:$0xff] %v2565_v2 }
 0x121   : > { %v2567_v3 = vpop.f32.mrf.mxu0 }
 0x122   : > { %v943_v61 = vmax.f32 %v2565_v2, %v2567_v3 }
 0x123   : > { %v2569_v4 = vpop.f32.mrf.mxu0 }
 0x125   : > { %v2571_v5 = vpop.f32.mrf.mxu0 }
 0x126   : > { %v946_v50 = vmax.f32 %v2569_v4, %v2571_v5 }
 0x127   : > { %v2573_v6 = vpop.f32.mrf.mxu0 }
 0x129   : > { %v2575_v7 = vpop.f32.mrf.mxu0 }
 0x12a   : > { %v949_v58 = vmax.f32 %v2573_v6, %v2575_v7 }
 0x12b   : > { %v2577_v8 = vpop.f32.mrf.mxu0 }
 0x12d   : > { %v2579_v9 = vpop.f32.mrf.mxu0 }
 0x12e   : > { %v952_v46 = vmax.f32 %v2577_v8, %v2579_v9 }
 0x12f   : > { %v2581_v10 = vpop.f32.mrf.mxu0 }
 0x131   : > { %v2583_v11 = vpop.f32.mrf.mxu0 }
 0x132   : > { %v955_v55 = vmax.f32 %v2581_v10, %v2583_v11 }
 0x133   : > { %v2585_v12 = vpop.f32.mrf.mxu0 }
 0x135   : > { %v2587_v13 = vpop.f32.mrf.mxu0 }
 0x136   : > { %v958_v42 = vmax.f32 %v2585_v12, %v2587_v13 }
 0x137   : > { %v2589_v14 = vpop.f32.mrf.mxu0 }
 0x139   : > { %v2591_v15 = vpop.f32.mrf.mxu0 }
 0x13a   : > { %v961_v51 = vmax.f32 %v2589_v14, %v2591_v15 }
 0x13b   : > { %v2593_v16 = vpop.f32.mrf.mxu0 }
 0x13d   : > { %v2595_v17 = vpop.f32.mrf.mxu0 }
 0x13e   : > { %v964_v38 = vmax.f32 %v2593_v16, %v2595_v17 }
 0x13f   : > { %v2597_v18 = vpop.f32.mrf.mxu0 }
 0x141   : > { %v2599_v19 = vpop.f32.mrf.mxu0 }
 0x142   : > { %v967_v47 = vmax.f32 %v2597_v18, %v2599_v19 }
 0x143   : > { %v2601_v20 = vpop.f32.mrf.mxu0 }
 0x145   : > { %v2603_v21 = vpop.f32.mrf.mxu0 }
 0x146   : > { %v970_v34 = vmax.f32 %v2601_v20, %v2603_v21 }
 0x147   : > { %v2605_v22 = vpop.f32.mrf.mxu0 }
 0x149   : > { %v2607_v23 = vpop.f32.mrf.mxu0 }
 0x14a   : > { %v973_v43 = vmax.f32 %v2605_v22, %v2607_v23 }
 0x14b   : > { %v2609_v24 = vpop.f32.mrf.mxu0 }
 0x14d   : > { %v2611_v25 = vpop.f32.mrf.mxu0 }
 0x14e   : > { %v976_v31 = vmax.f32 %v2609_v24, %v2611_v25 }
 0x14f   : > { %v2613_v26 = vpop.f32.mrf.mxu0 }
 0x151   : > { %v2615_v27 = vpop.f32.mrf.mxu0 }
 0x152   : > { %v979_v28 = vmax.f32 %v2613_v26, %v2615_v27 }
 0x153   : > { %v2619_v29 = vpop.f32.mrf.mxu0 }
 0x154   : > { %980 = vmax.xlane.f32.xlu1 %v979_v28 }
 0x155   : > { %v2621_v30 = vpop.f32.mrf.mxu0 }
 0x156   : > { %v982_v39 = vmax.f32 %v2619_v29, %v2621_v30 }
 0x157   : > { %v2625_v32 = vpop.f32.mrf.mxu0 }
 0x158   : > { %977 = vmax.xlane.f32.xlu1 %v976_v31 }
 0x159   : > { %v2627_v33 = vpop.f32.mrf.mxu0 }
 0x15a   : > { %v985_v35 = vmax.f32 %v2625_v32, %v2627_v33 }
 0x15b   : > { %v2633_v36 = vpop.f32.mrf.mxu0 }
 0x15c   : > { %3138 = vst [vmem:[#allocation12_spill] sm:$0xff] %v2633_v36  ;;  %971 = vmax.xlane.f32.xlu1 %v970_v34  ;;  %986 = vmax.xlane.f32.xlu0 %v985_v35 }
 0x15d   : > { %v2635_v37 = vpop.f32.mrf.mxu0 }
 0x15e   : > { %3139 = vst [vmem:[#allocation13_spill] sm:$0xff] %v2635_v37 }
 0x15f   : > { %v2641_v40 = vpop.f32.mrf.mxu0 }
 0x160   : > { %3140 = vst [vmem:[#allocation14_spill] sm:$0xff] %v2641_v40  ;;  %965 = vmax.xlane.f32.xlu1 %v964_v38  ;;  %983 = vmax.xlane.f32.xlu0 %v982_v39 }
 0x161   : > { %v2643_v41 = vpop.f32.mrf.mxu0 }
 0x162   : > { %3141 = vst [vmem:[#allocation15_spill] sm:$0xff] %v2643_v41 }
 0x163   : > { %v2649_v44 = vpop.f32.mrf.mxu0 }
 0x164   : > { %3142 = vst [vmem:[#allocation16_spill] sm:$0xff] %v2649_v44  ;;  %959 = vmax.xlane.f32.xlu1 %v958_v42  ;;  %974 = vmax.xlane.f32.xlu0 %v973_v43 }
 0x165   : > { %v2651_v45 = vpop.f32.mrf.mxu0 }
 0x166   : > { %3143 = vst [vmem:[#allocation17_spill] sm:$0xff] %v2651_v45 }
 0x167   : > { %v2657_v48 = vpop.f32.mrf.mxu0 }
 0x168   : > { %3144 = vst [vmem:[#allocation18_spill] sm:$0xff] %v2657_v48  ;;  %953 = vmax.xlane.f32.xlu1 %v952_v46  ;;  %968 = vmax.xlane.f32.xlu0 %v967_v47 }
 0x169   : > { %v2659_v49 = vpop.f32.mrf.mxu0 }
 0x16a   : > { %3145 = vst [vmem:[#allocation19_spill] sm:$0xff] %v2659_v49 }
 0x16b   : > { %v2665_v52 = vpop.f32.mrf.mxu0 }
 0x16c   : > { %3146 = vst [vmem:[#allocation20_spill] sm:$0xff] %v2665_v52  ;;  %947 = vmax.xlane.f32.xlu1 %v946_v50  ;;  %962 = vmax.xlane.f32.xlu0 %v961_v51 }
 0x16d   : > { %v2667_v53 = vpop.f32.mrf.mxu0 }
 0x16e   : > { %3147 = vst [vmem:[#allocation21_spill] sm:$0xff] %v2667_v53 }
 0x16f   : > { %v2673_v56 = vpop.f32.mrf.mxu0 }
 0x170   : > { %3148 = vst [vmem:[#allocation22_spill] sm:$0xff] %v2673_v56  ;;  %941 = vmax.xlane.f32.xlu1 %v940_v54  ;;  %956 = vmax.xlane.f32.xlu0 %v955_v55 }
 0x171   : > { %v2675_v57 = vpop.f32.mrf.mxu0 }
 0x172   : > { %3149 = vst [vmem:[#allocation23_spill] sm:$0xff] %v2675_v57 }
 0x173   : > { %v2679_v59 = vpop.f32.mrf.mxu0 }
 0x174   : > { %3150 = vst [vmem:[#allocation24_spill] sm:$0xff] %v2679_v59  ;;  %950 = vmax.xlane.f32.xlu0 %v949_v58 }
 0x175   : > { %v2681_v60 = vpop.f32.mrf.mxu0 }
 0x176   : > { %3151 = vst [vmem:[#allocation25_spill] sm:$0xff] %v2681_v60 }
 0x177   : > { %v2685_v62 = vpop.f32.mrf.mxu0 }
 0x178   : > { %944 = vmax.xlane.f32.xlu0 %v943_v61 }
 0x179   : > { %v2687_v63 = vpop.f32.mrf.mxu0 }
 0x17b   : > { %v2689_v28 = vpop.f32.mrf.mxu0 }
 0x17d   : > { %v2691_v31 = vpop.f32.mrf.mxu0 }
 0x17f   : > { %v2693_v34 = vpop.f32.mrf.mxu0 }
 0x181   : > { %v2695_v35 = vpop.f32.mrf.mxu0 }
 0x182   : > { %v1015_v2 = vmax.f32 %v2693_v34, %v2695_v35 }
 0x183   : > { %v2697_v38 = vpop.f32.mrf.mxu0 }
 0x185   : > { %v2699_v39 = vpop.f32.mrf.mxu0 }
 0x187   : > { %v2701_v42 = vpop.f32.mrf.mxu0 }
 0x188   : > { %3152 = vst [vmem:[#allocation26_spill] sm:$0xff] %v2701_v42 }
 0x189   : > { %v2703_v43 = vpop.f32.mrf.mxu0 }
 0x18a   : > { %v1021_v61 = vmax.f32 %v2701_v42, %v2703_v43  ;;  %v1018_v42 = vmax.f32 %v2697_v38, %v2699_v39 }
 0x18b   : > { %v2705_v46 = vpop.f32.mrf.mxu0 }
 0x18d   : > { %v2707_v47 = vpop.f32.mrf.mxu0 }
 0x18f   : > { %v2709_v50 = vpop.f32.mrf.mxu0 }
 0x190   : > { %3153 = vst [vmem:[#allocation27_spill] sm:$0xff] %v2709_v50 }
 0x191   : > { %v2711_v51 = vpop.f32.mrf.mxu0 }
 0x192   : > { %3154 = vst [vmem:[#allocation28_spill] sm:$0xff] %v2711_v51  ;;  %v1027_v54 = vmax.f32 %v2709_v50, %v2711_v51  ;;  %v1024_v50 = vmax.f32 %v2705_v46, %v2707_v47 }
 0x193   : > { %v2715_v55 = vpop.f32.mrf.mxu0 }
 0x194   : > { %1028 = vmax.xlane.f32.xlu0 %v1027_v54 }
 0x195   : > { %v2717_v58 = vpop.f32.mrf.mxu0 }
 0x196   : > { %v1030_v0 = vmax.f32 %v2715_v55, %v2717_v58 }
 0x197   : > { %v2723_v1 = vpop.f32.mrf.mxu0 }
 0x198   : > { %1022 = vmax.xlane.f32.xlu0 %v1021_v61  ;;  %1031 = vmax.xlane.f32.xlu1 %v1030_v0  ;;  %v1012_v0 = vmax.f32 %v2689_v28, %v2691_v31  ;;  %v1009_v61 = vmax.f32 %v2685_v62, %v2687_v63 }
 0x199   : > { %v2729_v51 = vpop.f32.mrf.mxu0 }
 0x19a   : > { %v1033_v54 = vmax.f32 %v2723_v1, %v2729_v51 }
 0x19c   : > { %1016 = vmax.xlane.f32.xlu0 %v1015_v2  ;;  %1025 = vmax.xlane.f32.xlu1 %v1024_v50  ;;  %v1006_v2 = vmax.f32 %v2679_v59, %v2681_v60  ;;  %v1003_v50 = vmax.f32 %v2673_v56, %v2675_v57 }
 0x1a0   : > { %1019 = vmax.xlane.f32.xlu1 %v1018_v42  ;;  %1034 = vmax.xlane.f32.xlu0 %v1033_v54  ;;  %v1000_v42 = vmax.f32 %v2665_v52, %v2667_v53  ;;  %v997_v54 = vmax.f32 %v2657_v48, %v2659_v49  ;;  %v477_v48 = vld [vmem:[%s2757_s9 + $0x98] sm:$0xff] }
 0x1a4   : > { %1013 = vmax.xlane.f32.xlu1 %v1012_v0  ;;  %1010 = vmax.xlane.f32.xlu0 %v1009_v61  ;;  %v994_v0 = vmax.f32 %v2649_v44, %v2651_v45  ;;  %v991_v61 = vmax.f32 %v2641_v40, %v2643_v41  ;;  %v476_v40 = vld [vmem:[%s2757_s9 + $0x90] sm:$0xff]  ;;  %v461_v45 = vld [vmem:[%s2757_s9 + $0x18] sm:$0xff] }
 0x1a8   : > { %1007 = vmax.xlane.f32.xlu1 %v1006_v2  ;;  %1004 = vmax.xlane.f32.xlu0 %v1003_v50  ;;  %v988_v2 = vmax.f32 %v2633_v36, %v2635_v37  ;;  %v458_v50 = vld [vmem:[%s2757_s9] sm:$0xff]  ;;  %v460_v37 = vld [vmem:[%s2757_s9 + $0x10] sm:$0xff] }
 0x1a9   : > { %v2001_v44 = vpack.i.bf16 %v460_v37, %v476_v40 }
 0x1ac   : > { %1001 = vmax.xlane.f32.xlu1 %v1000_v42  ;;  %998 = vmax.xlane.f32.xlu0 %v997_v54  ;;  %v474_v42 = vld [vmem:[%s2757_s9 + $0x80] sm:$0xff] }
 0x1ad   : > { %v1997_v54 = vpack.i.bf16 %v458_v50, %v474_v42  ;;  %v2003_v42 = vpack.i.bf16 %v461_v45, %v477_v48  ;;  %v463_v45 = vld [vmem:[%s2757_s9 + $0x28] sm:$0xff] }
 0x1b0   : > { %995 = vmax.xlane.f32.xlu1 %v994_v0  ;;  %992 = vmax.xlane.f32.xlu0 %v991_v61  ;;  %v459_v0 = vld [vmem:[%s2757_s9 + $0x8] sm:$0xff] }
 0x1b1   : > { %v475_v61 = vld [vmem:[%s2757_s9 + $0x88] sm:$0xff] }
 0x1b2   : > { %v1999_v36 = vpack.i.bf16 %v459_v0, %v475_v61  ;;  %v462_v0 = vld [vmem:[%s2757_s9 + $0x20] sm:$0xff] }
 0x1b3   : > { %v478_v61 = vld [vmem:[%s2757_s9 + $0xa0] sm:$0xff] }
 0x1b4   : > { %989 = vmax.xlane.f32.xlu1 %v988_v2  ;;  %v2005_v56 = vpack.i.bf16 %v462_v0, %v478_v61  ;;  %v464_v0 = vld [vmem:[%s2757_s9 + $0x30] sm:$0xff] }
 0x1dd   : > { %v2763_v2 = vpop.xlane.xlu1 %980  ;;  %1998 = vxpose.xlu0.b32.start [1/16] (narrow) %v1997_v54, 40 }
 0x1de   : > { %v1063_v48 = vsub.f32 %v2615_v27, %v2763_v2  ;;  %v480_v27 = vld [vmem:[%s2757_s9 + $0xb0] sm:$0xff] }
 0x1e0   : > { %v1154_v61 = vmul.f32 1.442695, %v1063_v48 }
 0x1e1   : > { %v2767_v41 = vpop.xlane.xlu1 %977  ;;  %2000 = vxpose.xlu0.b32.cont [2/16] (narrow) %v1999_v36, 40 }
 0x1e5   : > { %v2771_v49 = vpop.xlane.xlu1 %971  ;;  %v2773_v50 = vpop.xlane.xlu0 %986  ;;  %2002 = vxpose.xlu0.b32.cont [3/16] (narrow) %v2001_v44, 40 }
 0x1e6   : > { %v1066_v54 = vsub.f32 %v2625_v32, %v2773_v50  ;;  %v1067_v52 = vsub.f32 %v2627_v33, %v2773_v50  ;;  %v479_v32 = vld [vmem:[%s2757_s9 + $0xa8] sm:$0xff] }
 0x1e8   : > { %v1160_v36 = vmul.f32 1.442695, %v1066_v54  ;;  %v1162_v53 = vmul.f32 1.442695, %v1067_v52 }
 0x1e9   : > { %v2781_v37 = vpop.xlane.xlu1 %965  ;;  %v2783_v40 = vpop.xlane.xlu0 %983  ;;  %2004 = vxpose.xlu0.b32.cont [4/16] (narrow) %v2003_v42, 40  ;;  %v1062_v42 = vsub.f32 %v2613_v26, %v2763_v2  ;;  %v1060_v26 = vsub.f32 %v2609_v24, %v2767_v41  ;;  %v466_v24 = vld [vmem:[%s2757_s9 + $0x40] sm:$0xff] }
 0x1ea   : > { %v1064_v44 = vsub.f32 %v2619_v29, %v2783_v40  ;;  %v1065_v33 = vsub.f32 %v2621_v30, %v2783_v40  ;;  %2054 = vpow2.f32 %v1160_v36  ;;  %v2007_v29 = vpack.i.bf16 %v463_v45, %v479_v32  ;;  %v465_v45 = vld [vmem:[%s2757_s9 + $0x38] sm:$0xff] }
 0x1eb   : > { %2056 = vpow2.f32 %v1162_v53  ;;  %v1061_v30 = vsub.f32 %v2611_v25, %v2767_v41  ;;  %v2009_v53 = vpack.i.bf16 %v464_v0, %v480_v27  ;;  %v481_v32 = vld [vmem:[%s2757_s9 + $0xb8] sm:$0xff]  ;;  %v482_v0 = vld [vmem:[%s2757_s9 + $0xc0] sm:$0xff]  ;;  %v1057_v27 = vsub.f32 %v2603_v21, %v2771_v49  ;;  %v483_v21 = vld [vmem:[%s2757_s9 + $0xc8] sm:$0xff] }
 0x1ec   : > { %v1156_v54 = vmul.f32 1.442695, %v1064_v44  ;;  %v1158_v57 = vmul.f32 1.442695, %v1065_v33 }
 0x1ed   : > { %v2793_v59 = vpop.xlane.xlu1 %959  ;;  %v2795_v52 = vpop.xlane.xlu0 %974  ;;  %2006 = vxpose.xlu0.b32.cont [5/16] (narrow) %v2005_v56, 40  ;;  %v1152_v56 = vmul.f32 1.442695, %v1062_v42  ;;  %v1150_v48 = vmul.f32 1.442695, %v1061_v30 }
 0x1ee   : > { %2058 = vpow2.f32 %v1156_v54  ;;  %v1059_v25 = vsub.f32 %v2607_v23, %v2795_v52  ;;  %v2011_v54 = vpack.i.bf16 %v465_v45, %v481_v32  ;;  %v1058_v42 = vsub.f32 %v2605_v22, %v2795_v52  ;;  %v467_v45 = vld [vmem:[%s2757_s9 + $0x48] sm:$0xff] }
 0x1ef   : > { %2060 = vpow2.f32 %v1158_v57  ;;  %v1056_v22 = vsub.f32 %v2601_v20, %v2771_v49  ;;  %v1142_v32 = vmul.f32 1.442695, %v1057_v27  ;;  %v484_v27 = vld [vmem:[%s2757_s9 + $0xd0] sm:$0xff] }
 0x1f0   : > { %2062 = vpow2.f32 %v1154_v61  ;;  %v1146_v23 = vmul.f32 1.442695, %v1059_v25 }
 0x1f1   : > { %v2803_v36 = vpop.xlane.xlu1 %953  ;;  %v2805_v44 = vpop.xlane.xlu0 %968  ;;  %2008 = vxpose.xlu0.b32.cont [6/16] (narrow) %v2007_v29, 40  ;;  %2064 = vpow2.f32 %v1152_v56  ;;  %v1148_v29 = vmul.f32 1.442695, %v1060_v26  ;;  %v1144_v26 = vmul.f32 1.442695, %v1058_v42 }
 0x1f2   : > { %2066 = vpow2.f32 %v1150_v48  ;;  %v1055_v48 = vsub.f32 %v2599_v19, %v2805_v44  ;;  %v1140_v42 = vmul.f32 1.442695, %v1056_v22  ;;  %v1053_v19 = vsub.f32 %v2595_v17, %v2781_v37  ;;  %v485_v17 = vld [vmem:[%s2757_s9 + $0xd8] sm:$0xff] }
 0x1f3   : > { %2068 = vpow2.f32 %v1148_v29  ;;  %v2015_v29 = vpack.i.bf16 %v467_v45, %v483_v21 }
 0x1f4   : > { %2070 = vpow2.f32 %v1146_v23  ;;  %v1138_v23 = vmul.f32 1.442695, %v1055_v48  ;;  %v1134_v21 = vmul.f32 1.442695, %v1053_v19 }
 0x1f5   : > { %v2813_v57 = vpop.xlane.xlu1 %947  ;;  %v2815_v33 = vpop.xlane.xlu0 %962  ;;  %2010 = vxpose.xlu0.b32.cont [7/16] (narrow) %v2009_v53, 40  ;;  %v2013_v53 = vpack.i.bf16 %v466_v24, %v482_v0  ;;  %2072 = vpow2.f32 %v1144_v26  ;;  %v1054_v24 = vsub.f32 %v2597_v18, %v2805_v44  ;;  %v468_v0 = vld [vmem:[%s2757_s9 + $0x50] sm:$0xff]  ;;  %v1052_v18 = vsub.f32 %v2593_v16, %v2781_v37  ;;  %v469_v26 = vld [vmem:[%s2757_s9 + $0x58] sm:$0xff] }
 0x1f6   : > { %2074 = vpow2.f32 %v1142_v32  ;;  %v1051_v32 = vsub.f32 %v2591_v15, %v2815_v33  ;;  %v1050_v16 = vsub.f32 %v2589_v14, %v2815_v33  ;;  %v1049_v15 = vsub.f32 %v2587_v13, %v2793_v59 }
 0x1f7   : > { %v2055_v61 = vpop.eup %2054  ;;  %2076 = vpow2.f32 %v1140_v42  ;;  %v1136_v22 = vmul.f32 1.442695, %v1054_v24  ;;  %v486_v42 = vld [vmem:[%s2757_s9 + $0xe0] sm:$0xff]  ;;  %v1048_v14 = vsub.f32 %v2585_v12, %v2793_v59  ;;  %v1045_v12 = vsub.f32 %v2579_v9, %v2803_v36 }
 0x1f8   : > { %v2057_v56 = vpop.eup %2056  ;;  %2078 = vpow2.f32 %v1138_v23  ;;  %v1128_v23 = vmul.f32 1.442695, %v1050_v16 }
 0x1f9   : > { %v2823_v30 = vpop.xlane.xlu1 %941  ;;  %v2825_v60 = vpop.xlane.xlu0 %956  ;;  %2012 = vxpose.xlu0.b32.cont [8/16] (narrow) %v2011_v54, 40  ;;  %1292 = vmatprep.subr.mxu1 %v2057_v56  ;;  %v2017_v56 = vpack.i.bf16 %v468_v0, %v484_v27  ;;  %2080 = vpow2.f32 %v1136_v22  ;;  %v1130_v0 = vmul.f32 1.442695, %v1051_v32  ;;  %v1126_v22 = vmul.f32 1.442695, %v1049_v15  ;;  %v472_v32 = vld [vmem:[%s2757_s9 + $0x70] sm:$0xff] }
 0x1fa   : > { %1387 = vxpose.xlu1.b32.start [1/16] (narrow) %v2823_v30, 8  ;;  %1293 = vmatpush1.xpose.msra.mxu1 %v2055_v61  ;;  %2082 = vpow2.f32 %v1134_v21  ;;  %v1047_v13 = vsub.f32 %v2583_v11, %v2825_v60  ;;  %v1046_v21 = vsub.f32 %v2581_v10, %v2825_v60  ;;  %v1044_v10 = vsub.f32 %v2577_v8, %v2803_v36  ;;  %v489_v15 = vld [vmem:[%s2757_s9 + $0xf8] sm:$0xff] }
 0x1fb   : > { %v2059_v25 = vpop.eup %2058 }
 0x1fc   : > { %v2061_v20 = vpop.eup %2060 }
 0x1fd   : > { %v2834_v54 = vpop.xlane.xlu0 %950  ;;  %2014 = vxpose.xlu0.b32.cont [9/16] (narrow) %v2013_v53, 40  ;;  %1294 = vmatprep.subr.mxu1 %v2061_v20  ;;  %v2063_v61 = vpop.eup %2062  ;;  %v470_v20 = vld [vmem:[%s2757_s9 + $0x60] sm:$0xff] }
 0x1fe   : > { %1295 = vmatpush1.xpose.msra.mxu1 %v2059_v25  ;;  %v2065_v45 = vpop.eup %2064  ;;  %v2019_v25 = vpack.i.bf16 %v469_v26, %v485_v17  ;;  %v2021_v19 = vpack.i.bf16 %v470_v20, %v486_v42  ;;  %v1120_v42 = vmul.f32 1.442695, %v1046_v21 }
 0x1ff   : > { %1296 = vmatprep.subr.mxu1 %v2063_v61  ;;  %v2067_v48 = vpop.eup %2066  ;;  %v471_v61 = vld [vmem:[%s2757_s9 + $0x68] sm:$0xff] }
 0x200   : > { %v2069_v24 = vpop.eup %2068 }
 0x201   : > { %v2842_v53 = vpop.xlane.xlu0 %944  ;;  %2016 = vxpose.xlu0.b32.cont [10/16] (narrow) %v2015_v29, 40  ;;  %v1132_v29 = vmul.f32 1.442695, %v1052_v18  ;;  %v2071_v27 = vpop.eup %2070 }
 0x202   : > { %1388 = vxpose.xlu1.b32.cont [2/16] (narrow) %v2842_v53, 8  ;;  %1297 = vmatpush1.xpose.msra.mxu1 %v2065_v45  ;;  %v2073_v18 = vpop.eup %2072  ;;  %v1124_v45 = vmul.f32 1.442695, %v1048_v14  ;;  %v1043_v14 = vsub.f32 %v2575_v7, %v2834_v54  ;;  %v1040_v7 = vsub.f32 %v2569_v4, %v2813_v57 }
 0x203   : > { %1298 = vmatprep.subr.mxu1 %v2067_v48  ;;  %2084 = vpow2.f32 %v1132_v29  ;;  %v2075_v26 = vpop.eup %2074  ;;  %v488_v48 = vld [vmem:[%s2757_s9 + $0xf0] sm:$0xff]  ;;  %v380_v29 = vlaneseq }
 0x204   : > { %2086 = vpow2.f32 %v1130_v0  ;;  %v2077_v11 = vpop.eup %2076  ;;  %v2025_v20 = vpack.i.bf16 %v472_v32, %v488_v48  ;;  %v2268_v0 = vmov -inf  }
 0x205   : > { %2018 = vxpose.xlu0.b32.cont [11/16] (narrow) %v2017_v56, 40  ;;  %v487_v56 = vld [vmem:[%s2757_s9 + $0xe8] sm:$0xff]  ;;  %2088 = vpow2.f32 %v1128_v23  ;;  %v2079_v16 = vpop.eup %2078  ;;  %vm2873_vm1 = vcmp.lt.s32.totalorder %v380_v29, 256 }
 0x206   : > { %1389 = vxpose.xlu1.b32.cont [3/16] (narrow) %v2813_v57, 8  ;;  %1299 = vmatpush1.xpose.msra.mxu1 %v2069_v24  ;;  %v2023_v17 = vpack.i.bf16 %v471_v61, %v487_v56  ;;  %2090 = vpow2.f32 %v1126_v22  ;;  %v473_v24 = vld [vmem:[%s2757_s9 + $0x78] sm:$0xff]  ;;  %384 = vst.msk [vmem:[#allocation3] sm:$0x3] %vm2873_vm1, %v2268_v0  ;;  %v1041_v56 = vsub.f32 %v2571_v5, %v2813_v57  ;;  %v3158_v57 = vld [vmem:[#allocation10_spill] sm:$0xff] }
 0x207   : > { %1300 = vmatprep.subr.mxu1 %v2071_v27  ;;  %2092 = vpow2.f32 %v1124_v45  ;;  %v2081_v27 = vpop.eup %2080  ;;  %v2027_v8 = vpack.i.bf16 %v473_v24, %v489_v15  ;;  %v3157_v45 = vld [vmem:[#allocation11_spill] sm:$0xff] }
 0x208   : > { %v2083_v23 = vpop.eup %2082 }
 0x209   : > { %2020 = vxpose.xlu0.b32.cont [12/16] (narrow) %v2019_v25, 40  ;;  %v1122_v25 = vmul.f32 1.442695, %v1047_v13 }
 0x20a   : > { %1390 = vxpose.xlu1.b32.cont [4/16] (narrow) %v2834_v54, 8  ;;  %1301 = vmatpush1.xpose.msra.mxu1 %v2073_v18  ;;  %v1114_v18 = vmul.f32 1.442695, %v1043_v14 }
 0x20b   : > { %1302 = vmatprep.subr.mxu1 %v2075_v26  ;;  %2094 = vpow2.f32 %v1122_v25 }
 0x20c   : > { %2096 = vpow2.f32 %v1120_v42 }
 0x20d   : > { %2022 = vxpose.xlu0.b32.cont [13/16] (narrow) %v2021_v19, 40  ;;  %v1118_v19 = vmul.f32 1.442695, %v1045_v12  ;;  %v1038_v12 = vsub.f32 %v3157_v45, %v2842_v53 }
 0x20e   : > { %1391 = vxpose.xlu1.b32.cont [5/16] (narrow) %v2803_v36, 8  ;;  %1303 = vmatpush1.xpose.msra.mxu1 %v2077_v11  ;;  %v1116_v36 = vmul.f32 1.442695, %v1044_v10  ;;  %v3159_v11 = vld [vmem:[#allocation9_spill] sm:$0xff] }
 0x20f   : > { %1304 = vmatprep.subr.mxu1 %v2079_v16  ;;  %2098 = vpow2.f32 %v1118_v19  ;;  %v1036_v25 = vsub.f32 %v3159_v11, %v2823_v30 }
 0x210   : > { %v2085_v61 = vpop.eup %2084  ;;  %2100 = vpow2.f32 %v1116_v36 }
 0x211   : > { %2024 = vxpose.xlu0.b32.cont [14/16] (narrow) %v2023_v17, 40  ;;  %v2087_v22 = vpop.eup %2086  ;;  %2102 = vpow2.f32 %v1114_v18  ;;  %v1108_v17 = vmul.f32 1.442695, %v1040_v7  ;;  %v1100_v24 = vmul.f32 1.442695, %v1036_v25  ;;  %v3161_v7 = vld [vmem:[#allocation27_spill] sm:$0xff] }
 0x212   : > { %1392 = vxpose.xlu1.b32.cont [6/16] (narrow) %v2825_v60, 8  ;;  %1305 = vmatpush1.xpose.msra.mxu1 %v2081_v27  ;;  %v1042_v60 = vsub.f32 %v2573_v6, %v2834_v54  ;;  %v2089_v6 = vpop.eup %2088  ;;  %v1110_v54 = vmul.f32 1.442695, %v1041_v56 }
 0x213   : > { %1306 = vmatprep.subr.mxu1 %v2083_v23  ;;  %v2091_v26 = vpop.eup %2090 }
 0x214   : > { %v1112_v13 = vmul.f32 1.442695, %v1042_v60  ;;  %v2093_v4 = vpop.eup %2092 }
 0x215   : > { %2026 = vxpose.xlu0.b32.cont [15/16] (narrow) %v2025_v20, 40 }
 0x216   : > { %1393 = vxpose.xlu1.b32.cont [7/16] (narrow) %v2793_v59, 8  ;;  %1307 = vmatpush1.xpose.msra.mxu1 %v2085_v61  ;;  %v1039_v59 = vsub.f32 %v2567_v3, %v2842_v53  ;;  %2104 = vpow2.f32 %v1112_v13  ;;  %v1104_v53 = vmul.f32 1.442695, %v1038_v12 }
 0x217   : > { %1308 = vmatprep.subr.mxu1 %v2087_v22  ;;  %2106 = vpow2.f32 %v1110_v54 }
 0x218   : > { %v1106_v21 = vmul.f32 1.442695, %v1039_v59  ;;  %v2095_v32 = vpop.eup %2094  ;;  %2108 = vpow2.f32 %v1108_v17 }
 0x219   : > { %2028 = vxpose.xlu0.b32.end [16/16] (narrow) %v2027_v8, 40 }
 0x21a   : > { %1394 = vxpose.xlu1.b32.cont [8/16] (narrow) %v2815_v33, 8  ;;  %1309 = vmatpush1.xpose.msra.mxu1 %v2089_v6  ;;  %v1037_v33 = vsub.f32 %v3158_v57, %v2823_v30  ;;  %2110 = vpow2.f32 %v1106_v21 }
 0x21b   : > { %1310 = vmatprep.subr.mxu1 %v2091_v26  ;;  %2112 = vpow2.f32 %v1104_v53 }
 0x21c   : > { %v1102_v16 = vmul.f32 1.442695, %v1037_v33  ;;  %v3162_v33 = vld [vmem:[#allocation26_spill] sm:$0xff] }
 0x21d   : > { %v2896_v5 = vpop.xlane.xlu0 %1028 }
 0x21e   : > { %1395 = vxpose.xlu1.b32.cont [9/16] (narrow) %v2781_v37, 8  ;;  %1311 = vmatpush1.xpose.msra.mxu1 %v2093_v4  ;;  %v2097_v37 = vpop.eup %2096  ;;  %2114 = vpow2.f32 %v1102_v16  ;;  %v1094_v13 = vsub.f32 %v3161_v7, %v2896_v5 }
 0x21f   : > { %1312 = vmatprep.subr.mxu1 %v2095_v32  ;;  %v2099_v20 = vpop.eup %2098  ;;  %2116 = vpow2.f32 %v1100_v24 }
 0x220   : > { %v2101_v15 = vpop.eup %2100  ;;  %v1216_v45 = vmul.f32 1.442695, %v1094_v13 }
 0x221   : > { %v2903_v3 = vpop.xlane.xlu0 %1022  ;;  %v2905_v48 = vpop.xlane.xlu1 %1031 }
 0x222   : > { %1396 = vxpose.xlu1.b32.cont [10/16] (narrow) %v2805_v44, 8  ;;  %1313 = vmatpush1.xpose.msra.mxu1 %v2097_v37  ;;  %v2103_v30 = vpop.eup %2102  ;;  %v1097_v14 = vsub.f32 %v2717_v58, %v2905_v48  ;;  %v1096_v61 = vsub.f32 %v2715_v55, %v2905_v48  ;;  %v1091_v4 = vsub.f32 %v2703_v43, %v2903_v3 }
 0x223   : > { %1314 = vmatprep.subr.mxu1 %v2099_v20  ;;  %v2105_v19 = vpop.eup %2104  ;;  %v1090_v21 = vsub.f32 %v3162_v33, %v2903_v3 }
 0x224   : > { %v2107_v23 = vpop.eup %2106  ;;  %v1222_v58 = vmul.f32 1.442695, %v1097_v14  ;;  %v1220_v55 = vmul.f32 1.442695, %v1096_v61  ;;  %v1210_v11 = vmul.f32 1.442695, %v1091_v4 }
 0x225   : > { %v2910_v10 = vpop.xlane.xlu0 %1016  ;;  %v2912_v42 = vpop.xlane.xlu1 %1025  ;;  %v1208_v37 = vmul.f32 1.442695, %v1090_v21  ;;  %v3167_v4 = vld [vmem:[#allocation21_spill] sm:$0xff] }
 0x226   : > { %1397 = vxpose.xlu1.b32.cont [11/16] (narrow) %v2771_v49, 8  ;;  %1315 = vmatpush1.xpose.msra.mxu1 %v2101_v15  ;;  %v1093_v54 = vsub.f32 %v2707_v47, %v2912_v42  ;;  %v1092_v12 = vsub.f32 %v2705_v46, %v2912_v42  ;;  %v1086_v15 = vsub.f32 %v2693_v34, %v2910_v10 }
 0x227   : > { %1316 = vmatprep.subr.mxu1 %v2103_v30 }
 0x228   : > { %v1214_v47 = vmul.f32 1.442695, %v1093_v54  ;;  %v1212_v32 = vmul.f32 1.442695, %v1092_v12  ;;  %v1200_v14 = vmul.f32 1.442695, %v1086_v15 }
 0x229   : > { %v2915_v44 = vpop.xlane.xlu1 %1019  ;;  %v2917_v0 = vpop.xlane.xlu0 %1034  ;;  %v3166_v54 = vld [vmem:[#allocation22_spill] sm:$0xff] }
 0x22a   : > { %v1098_v27 = vsub.f32 %v2723_v1, %v2917_v0  ;;  %1398 = vxpose.xlu1.b32.cont [12/16] (narrow) %v2795_v52, 8  ;;  %v1099_v49 = vsub.f32 %v2729_v51, %v2917_v0  ;;  %1317 = vmatpush1.xpose.msra.mxu1 %v2105_v19  ;;  %v2109_v1 = vpop.eup %2108  ;;  %v3160_v52 = vld [vmem:[#allocation28_spill] sm:$0xff]  ;;  %v1089_v46 = vsub.f32 %v2699_v39, %v2915_v44 }
 0x22b   : > { %1318 = vmatprep.subr.mxu1 %v2107_v23  ;;  %v1095_v56 = vsub.f32 %v3160_v52, %v2896_v5  ;;  %v2111_v51 = vpop.eup %2110  ;;  %v1088_v16 = vsub.f32 %v2697_v38, %v2915_v44  ;;  %v3163_v52 = vld [vmem:[#allocation25_spill] sm:$0xff] }
 0x22c   : > { %v1224_v8 = vmul.f32 1.442695, %v1098_v27  ;;  %v1226_v36 = vmul.f32 1.442695, %v1099_v49  ;;  %v1206_v20 = vmul.f32 1.442695, %v1089_v46 }
 0x22d   : > { %v2926_v60 = vpop.xlane.xlu1 %1013  ;;  %v2933_v18 = vpop.xlane.xlu0 %1010  ;;  %v1218_v6 = vmul.f32 1.442695, %v1095_v56  ;;  %v1204_v30 = vmul.f32 1.442695, %v1088_v16  ;;  %v3170_v16 = vld [vmem:[#allocation18_spill] sm:$0xff] }
 0x22e   : > { %1399 = vxpose.xlu1.b32.cont [13/16] (narrow) %v2767_v41, 8  ;;  %2118 = vpow2.f32 %v1224_v8  ;;  %1319 = vmatpush1.xpose.msra.mxu1 %v2109_v1  ;;  %v2113_v41 = vpop.eup %2112  ;;  %v1084_v49 = vsub.f32 %v2689_v28, %v2926_v60  ;;  %v1083_v8 = vsub.f32 %v2687_v63, %v2933_v18  ;;  %v1082_v61 = vsub.f32 %v2685_v62, %v2933_v18 }
 0x22f   : > { %2120 = vpow2.f32 %v1226_v36  ;;  %1320 = vmatprep.subr.mxu1 %v2111_v51  ;;  %v2115_v59 = vpop.eup %2114  ;;  %v3164_v51 = vld [vmem:[#allocation24_spill] sm:$0xff] }
 0x230   : > { %2122 = vpow2.f32 %v1222_v58  ;;  %v1194_v28 = vmul.f32 1.442695, %v1083_v8  ;;  %v1192_v63 = vmul.f32 1.442695, %v1082_v61 }
 0x231   : > { %v2935_v22 = vpop.xlane.xlu1 %1007  ;;  %v2942_v26 = vpop.xlane.xlu0 %1004  ;;  %2124 = vpow2.f32 %v1220_v55  ;;  %v3165_v55 = vld [vmem:[#allocation23_spill] sm:$0xff] }
 0x232   : > { %1400 = vxpose.xlu1.b32.cont [14/16] (narrow) %v2763_v2, 8  ;;  %1321 = vmatpush1.xpose.msra.mxu1 %v2113_v41  ;;  %v2117_v2 = vpop.eup %2116  ;;  %2126 = vpow2.f32 %v1218_v6  ;;  %v1081_v56 = vsub.f32 %v3163_v52, %v2935_v22  ;;  %v1080_v7 = vsub.f32 %v3164_v51, %v2935_v22  ;;  %v1079_v41 = vsub.f32 %v3165_v55, %v2942_v26 }
 0x233   : > { %1322 = vmatprep.subr.mxu1 %v2115_v59  ;;  %2128 = vpow2.f32 %v1216_v45  ;;  %v1078_v59 = vsub.f32 %v3166_v54, %v2942_v26 }
 0x234   : > { %2130 = vpow2.f32 %v1214_v47  ;;  %v1190_v62 = vmul.f32 1.442695, %v1081_v56  ;;  %v1188_v45 = vmul.f32 1.442695, %v1080_v7 }
 0x235   : > { %v2944_v17 = vpop.xlane.xlu1 %1001  ;;  %2132 = vpow2.f32 %v1212_v32  ;;  %v1184_v21 = vmul.f32 1.442695, %v1078_v59  ;;  %v3168_v32 = vld [vmem:[#allocation20_spill] sm:$0xff] }
 0x236   : > { %1401 = vxpose.xlu1.b32.cont [15/16] (narrow) %v2783_v40, 8  ;;  %1323 = vmatpush1.xpose.msra.mxu1 %v2117_v2  ;;  %v2958_v40 = vpop.xlane.xlu0 %998  ;;  %2134 = vpow2.f32 %v1210_v11  ;;  %v1186_v2 = vmul.f32 1.442695, %v1079_v41  ;;  %v1077_v47 = vsub.f32 %v3167_v4, %v2944_v17  ;;  %v1076_v11 = vsub.f32 %v3168_v32, %v2944_v17 }
 0x237   : > { %2136 = vpow2.f32 %v1208_v37  ;;  %v2269_v32 = vmov 1966171168  }
 0x238   : > { %2138 = vpow2.f32 %v1206_v20 }
 0x239   : > { %v2951_v57 = vpop.xlane.xlu1 %995  ;;  %2140 = vpow2.f32 %v1204_v30  ;;  %v3171_v30 = vld [vmem:[#allocation17_spill] sm:$0xff] }
 0x23a   : > { %1402 = vxpose.xlu1.b32.end [16/16] (narrow) %v2773_v50, 8  ;;  %v1087_v50 = vsub.f32 %v2695_v35, %v2910_v10  ;;  %v2967_v24 = vpop.xlane.xlu0 %992  ;;  %v1085_v35 = vsub.f32 %v2691_v31, %v2926_v60  ;;  %v1196_v31 = vmul.f32 1.442695, %v1084_v49 }
 0x23b   : > { %v2119_v25 = vpop.eup %2118 }
 0x23c   : > { %v2121_v53 = vpop.eup %2120  ;;  %v1202_v27 = vmul.f32 1.442695, %v1087_v50  ;;  %v1198_v23 = vmul.f32 1.442695, %v1085_v35  ;;  %v1074_v50 = vsub.f32 %v3170_v16, %v2958_v40 }
 0x23d   : > { %v2960_v43 = vpop.xlane.xlu1 %989  ;;  %1324 = vmatprep.subr.mxu1 %v2121_v53  ;;  %v2123_v39 = vpop.eup %2122 }
 0x23e   : > { %1419 = vxpose.xlu0.b32.start [1/16] (narrow) %v2960_v43, 8  ;;  %1325 = vmatpush2.xpose.msra.mxu1 %v2119_v25  ;;  %v2125_v38 = vpop.eup %2124  ;;  %2142 = vpow2.f32 %v1202_v27  ;;  %v1182_v25 = vmul.f32 1.442695, %v1077_v47  ;;  %v1176_v35 = vmul.f32 1.442695, %v1074_v50 }
 0x23f   : > { %1326 = vmatprep.subr.mxu1 %v2123_v39  ;;  %v2127_v19 = vpop.eup %2126  ;;  %2144 = vpow2.f32 %v1200_v14  ;;  %v1180_v39 = vmul.f32 1.442695, %v1076_v11  ;;  %v1456_v11 = vunpack.c.l.s4 %v2269_v32 }
 0x240   : > { %v2129_v34 = vpop.eup %2128  ;;  %2146 = vpow2.f32 %v1198_v23 }
 0x241   : > { %v2131_v36 = vpop.eup %2130  ;;  %2148 = vpow2.f32 %v1196_v31 }
 0x242   : > { %1420 = vxpose.xlu0.b32.cont [2/16] (narrow) %v2967_v24, 8  ;;  %1327 = vmatpush2.xpose.msra.mxu1 %v2125_v38  ;;  %v2133_v1 = vpop.eup %2132  ;;  %2150 = vpow2.f32 %v1194_v28  ;;  %v1073_v38 = vsub.f32 %v3171_v30, %v2951_v57  ;;  %v3175_v28 = vld [vmem:[#allocation13_spill] sm:$0xff] }
 0x243   : > { %1328 = vmatprep.subr.mxu1 %v2127_v19  ;;  %v2135_v58 = vpop.eup %2134  ;;  %2152 = vpow2.f32 %v1192_v63  ;;  %v3172_v19 = vld [vmem:[#allocation16_spill] sm:$0xff]  ;;  %v1069_v52 = vsub.f32 %v3175_v28, %v2960_v43 }
 0x244   : > { %v2137_v13 = vpop.eup %2136  ;;  %2154 = vpow2.f32 %v1190_v62  ;;  %v1072_v14 = vsub.f32 %v3172_v19, %v2951_v57  ;;  %v1174_v49 = vmul.f32 1.442695, %v1073_v38 }
 0x245   : > { %v2139_v6 = vpop.eup %2138  ;;  %2156 = vpow2.f32 %v1188_v45 }
 0x246   : > { %1421 = vxpose.xlu0.b32.cont [3/16] (narrow) %v2951_v57, 8  ;;  %1329 = vmatpush2.xpose.msra.mxu1 %v2129_v34  ;;  %v2141_v12 = vpop.eup %2140  ;;  %2158 = vpow2.f32 %v1186_v2  ;;  %v3173_v34 = vld [vmem:[#allocation15_spill] sm:$0xff] }
 0x247   : > { %1330 = vmatprep.subr.mxu1 %v2131_v36  ;;  %2160 = vpow2.f32 %v1184_v21  ;;  %v1071_v23 = vsub.f32 %v3173_v34, %v2967_v24  ;;  %v3174_v36 = vld [vmem:[#allocation14_spill] sm:$0xff] }
 0x248   : > { %2162 = vpow2.f32 %v1182_v25  ;;  %v1070_v31 = vsub.f32 %v3174_v36, %v2967_v24  ;;  %v3176_v24 = vld [vmem:[#allocation12_spill] sm:$0xff]  ;;  %v1459_v25 = vshrl.u32 %v380_v29, 7 }
 0x249   : > { %2164 = vpow2.f32 %v1180_v39  ;;  %v1068_v7 = vsub.f32 %v3176_v24, %v2960_v43 }
 0x24a   : > { %1422 = vxpose.xlu0.b32.cont [4/16] (narrow) %v2958_v40, 8  ;;  %1331 = vmatpush2.xpose.msra.mxu1 %v2133_v1  ;;  %v1172_v1 = vmul.f32 1.442695, %v1072_v14  ;;  %v3034_v39 = vsub.s32 0, %v1459_v25 }
 0x24b   : > { %1332 = vmatprep.subr.mxu1 %v2135_v58  ;;  %v2143_v33 = vpop.eup %2142  ;;  %v1168_v58 = vmul.f32 1.442695, %v1070_v31  ;;  %v1164_v55 = vmul.f32 1.442695, %v1068_v7 }
 0x24c   : > { %v2145_v46 = vpop.eup %2144 }
 0x24d   : > { %v2147_v37 = vpop.eup %2146 }
 0x24e   : > { %1423 = vxpose.xlu0.b32.cont [5/16] (narrow) %v2944_v17, 8  ;;  %1333 = vmatpush2.xpose.msra.mxu1 %v2137_v13  ;;  %v2149_v17 = vpop.eup %2148 }
 0x24f   : > { %1334 = vmatprep.subr.mxu1 %v2139_v6  ;;  %v2151_v27 = vpop.eup %2150 }
 0x252   : > { %1424 = vxpose.xlu0.b32.cont [6/16] (narrow) %v2942_v26, 8  ;;  %1335 = vmatpush2.xpose.msra.mxu1 %v2141_v12  ;;  %v3169_v26 = vld [vmem:[#allocation19_spill] sm:$0xff] }
 0x253   : > { %1336 = vmatprep.subr.mxu1 %v2143_v33  ;;  %v1075_v53 = vsub.f32 %v3169_v26, %v2958_v40 }
 0x255   : > { %v1178_v15 = vmul.f32 1.442695, %v1075_v53 }
 0x256   : > { %1425 = vxpose.xlu0.b32.cont [7/16] (narrow) %v2935_v22, 8  ;;  %1337 = vmatpush2.xpose.msra.mxu1 %v2145_v46  ;;  %v1457_v46 = vunpack.c.0.s8 %v1456_v11 }
 0x257   : > { %1338 = vmatprep.subr.mxu1 %v2147_v37  ;;  %2166 = vpow2.f32 %v1178_v15 }
 0x258   : > { %2168 = vpow2.f32 %v1176_v35  ;;  %v3031_v53 = vsub.s32 %v1457_v46, %v1459_v25 }
 0x259   : > { %v3001_v20 = vpop.trf.xlu0  ;;  %2170 = vpow2.f32 %v1174_v49 }
 0x25a   : > { %1426 = vxpose.xlu0.b32.cont [8/16] (narrow) %v2933_v18, 8  ;;  %v2030_v22 = vunpack.i.l.bf16 %v3001_v20  ;;  %1339 = vmatpush2.xpose.msra.mxu1 %v2149_v17  ;;  %v2153_v18 = vpop.eup %2152  ;;  %2172 = vpow2.f32 %v1172_v1 }
 0x25b   : > { %1340 = vmatprep.subr.mxu1 %v2151_v27  ;;  %v2155_v8 = vpop.eup %2154 }
 0x25c   : > { %1356 = vmatprep.mubr.f32.mxu1 %v2030_v22  ;;  %v2157_v57 = vpop.eup %2156  ;;  %v3036_v22 = vsub.s32 1, %v1459_v25 }
 0x25d   : > { %v3007_v40 = vpop.trf.xlu0  ;;  %v2159_v56 = vpop.eup %2158 }
 0x25e   : > { %1427 = vxpose.xlu0.b32.cont [9/16] (narrow) %v2926_v60, 8  ;;  %1341 = vmatpush2.xpose.msra.mxu1 %v2153_v18  ;;  %v1170_v60 = vmul.f32 1.442695, %v1071_v23  ;;  %v2161_v51 = vpop.eup %2160  ;;  %v2035_v2 = vunpack.i.l.bf16 %v3007_v40  ;;  %v2270_v18 = vmov 0.0  }
 0x25f   : > { %1342 = vmatprep.subr.mxu1 %v2155_v8  ;;  %v2163_v13 = vpop.eup %2162  ;;  %385 = vst.msk [vmem:[#allocation4] sm:$0x3] %vm2873_vm1, %v2270_v18 }
 0x260   : > { %2174 = vpow2.f32 %v1170_v60  ;;  %v2165_v41 = vpop.eup %2164 }
 0x261   : > { %v2039_v61 = vpop.trf.xlu0  ;;  %2176 = vpow2.f32 %v1168_v58 }
 0x262   : > { %1428 = vxpose.xlu0.b32.cont [10/16] (narrow) %v2910_v10, 8  ;;  %1343 = vmatpush2.xpose.msra.mxu1 %v2157_v57  ;;  %v1166_v10 = vmul.f32 1.442695, %v1069_v52  ;;  %v2040_v4 = vunpack.i.l.bf16 %v2039_v61  ;;  %v2043_v47 = vunpack.i.h.bf16 %v2039_v61 }
 0x263   : > { %1344 = vmatprep.subr.mxu1 %v2159_v56 }
 0x264   : > { %2178 = vpow2.f32 %v1166_v10  ;;  %v2167_v6 = vpop.eup %2166 }
 0x265   : > { %v2044_v63 = vpop.trf.xlu0  ;;  %2180 = vpow2.f32 %v1164_v55  ;;  %v2169_v43 = vpop.eup %2168 }
 0x266   : > { %1429 = vxpose.xlu0.b32.cont [11/16] (narrow) %v2915_v44, 8  ;;  %1345 = vmatpush2.xpose.msra.mxu1 %v2161_v51  ;;  %v2171_v44 = vpop.eup %2170  ;;  %v2048_v33 = vunpack.i.h.bf16 %v2044_v63 }
 0x267   : > { %1346 = vmatprep.subr.mxu1 %v2163_v13  ;;  %v2173_v54 = vpop.eup %2172 }
 0x269   : > { %v2049_v62 = vpop.trf.xlu0 }
 0x26a   : > { %1430 = vxpose.xlu0.b32.cont [12/16] (narrow) %v2903_v3, 8  ;;  %1347 = vmatpush2.xpose.msra.mxu1 %v2165_v41  ;;  %v2050_v21 = vunpack.i.l.bf16 %v2049_v62 }
 0x26b   : > { %1348 = vmatprep.subr.mxu1 %v2167_v6 }
 0x26d   : > { %v2175_v59 = vpop.eup %2174 }
 0x26e   : > { %1431 = vxpose.xlu0.b32.cont [13/16] (narrow) %v2912_v42, 8  ;;  %1349 = vmatpush2.xpose.msra.mxu1 %v2169_v43  ;;  %v2177_v3 = vpop.eup %2176  ;;  %v2033_v42 = vunpack.i.h.bf16 %v3001_v20  ;;  %v1451_v20 = vld [vmem:[#allocation3] sm:$0x3] }
 0x26f   : > { %1350 = vmatprep.subr.mxu1 %v2171_v44 }
 0x271   : > { %v2179_v45 = vpop.eup %2178 }
 0x272   : > { %1432 = vxpose.xlu0.b32.cont [14/16] (narrow) %v2896_v5, 8  ;;  %1351 = vmatpush2.xpose.msra.mxu1 %v2173_v54  ;;  %v2181_v12 = vpop.eup %2180  ;;  %v2038_v5 = vunpack.i.h.bf16 %v3007_v40 }
 0x273   : > { %1352 = vmatprep.subr.mxu1 %v2175_v59 }
 0x276   : > { %1433 = vxpose.xlu0.b32.cont [15/16] (narrow) %v2905_v48, 8  ;;  %1353 = vmatpush2.xpose.msra.mxu1 %v2177_v3  ;;  %v2045_v48 = vunpack.i.l.bf16 %v2044_v63 }
 0x277   : > { %1354 = vmatprep.subr.mxu1 %v2179_v45 }
 0x27a   : > { %1434 = vxpose.xlu0.b32.end [16/16] (narrow) %v2917_v0, 8  ;;  %1355 = vmatpush2.xpose.msra.mxu1 %v2181_v12  ;;  %v2053_v0 = vunpack.i.h.bf16 %v2049_v62  ;;  %v1403_v26 = vpop.trf.xlu1 }
 0x27d   : > { %1357 = vmatmul.mubr.f32.vlgmr.msra.gmra.mxu1 %v2033_v42 }
 0x27e   : > { %1362 = vmatprep.mubr.f32.mxu1 %v2035_v2 }
 0x281   : > { %1363 = vmatmul.mubr.f32.gmra.mxu1 %v2038_v5 }
 0x282   : > { %1368 = vmatprep.mubr.f32.mxu1 %v2040_v4 }
 0x285   : > { %1369 = vmatmul.mubr.f32.gmra.mxu1 %v2043_v47 }
 0x286   : > { %1374 = vmatprep.mubr.f32.mxu1 %v2045_v48 }
 0x289   : > { %1375 = vmatmul.mubr.f32.gmra.mxu1 %v2048_v33 }
 0x28a   : > { %1380 = vmatprep.mubr.f32.mxu1 %v2050_v21  ;;  %v1491_v21 = vld [vmem:[#allocation4] sm:$0x3] }
 0x28d   : > { %1381 = vmatmul.mubr.f32.gmra.mxu1 %v2053_v0 }
 0x2ba   : > { %v1435_v37 = vpop.trf.xlu0 }
 0x2bb   : > { %v1454_v16 = vcombine.low %v1403_v26, %v1435_v37 }
 0x2bd   : > { %v1461_v50 = vrot.slane %v1454_v16, %v3031_v53 }
 0x2bf   : > { %v1468_v17 = vrot.slane %v1461_v50, %v3031_v53 }
 0x2c1   : > { %v1470_v15 = vmax.f32 %v1451_v20, %v1468_v17 }
 0x2c3   : > { %v1471_v30 = vsub.f32 %v1451_v20, %v1470_v15  ;;  %v1478_v38 = vrot.slane %v1470_v15, %v3034_v39  ;;  %v1482_v29 = vrot.slane %v1470_v15, %v3036_v22  ;;  %1578 = vst.msk [vmem:[#allocation3] sm:$0x3] %vm2873_vm1, %v1470_v15 }
 0x2c5   : > { %v1472_v27 = vmul.f32 1.442695, %v1471_v30  ;;  %v1485_v35 = vsub.f32 %v1403_v26, %v1478_v38  ;;  %v1486_v40 = vsub.f32 %v1435_v37, %v1482_v29 }
 0x2c7   : > { %2182 = vpow2.f32 %v1472_v27  ;;  %v1487_v19 = vmul.f32 1.442695, %v1485_v35  ;;  %v1489_v14 = vmul.f32 1.442695, %v1486_v40 }
 0x2c9   : > { %2184 = vpow2.f32 %v1487_v19 }
 0x2ca   : > { %2186 = vpow2.f32 %v1489_v14 }
 0x2d4   : > { %v2183_v49 = vpop.eup %2182 }
 0x2d5   : > { %v1531_v34 = vrot.slane %v2183_v49, %v3034_v39  ;;  %v1535_v23 = vrot.slane %v2183_v49, %v3036_v22  ;;  %v1492_v32 = vmul.f32 %v2183_v49, %v1491_v21 }
 0x2d6   : > { %v2185_v8 = vpop.eup %2184 }
 0x2d7   : > { %v2187_v36 = vpop.eup %2186  ;;  %v1549_v31 = vrot.slane %v2185_v8, %v3034_v39  ;;  %v1538_v1 = vmul.f32 0.0, %v1531_v34  ;;  %v1539_v28 = vmul.f32 0.0, %v1535_v23 }
 0x2d8   : > { %v1553_v61 = vrot.slane %v2187_v36, %v3034_v39 }
 0x33d   : > { %v1358_v57 = vpop.f32.mrf.mxu1 }
 0x33e   : > { %v1554_v60 = vmul.f32 %v1549_v31, %v1358_v57 }
 0x33f   : > { %v1360_v52 = vpop.f32.mrf.mxu1 }
 0x340   : > { %v1562_v56 = vadd.f32 %v1554_v60, %v1538_v1  ;;  %v1555_v58 = vmul.f32 %v1553_v61, %v1360_v52 }
 0x341   : > { %v1364_v63 = vpop.f32.mrf.mxu1 }
 0x342   : > { %v1563_v51 = vadd.f32 %v1555_v58, %v1539_v28  ;;  %v1556_v24 = vmul.f32 %v1549_v31, %v1364_v63 }
 0x343   : > { %v1366_v7 = vpop.f32.mrf.mxu1 }
 0x344   : > { %v1564_v10 = vadd.f32 %v1556_v24, %v1538_v1  ;;  %v1557_v13 = vmul.f32 %v1553_v61, %v1366_v7 }
 0x345   : > { %v1370_v62 = vpop.f32.mrf.mxu1 }
 0x346   : > { %v1565_v55 = vadd.f32 %v1557_v13, %v1539_v28  ;;  %v1558_v41 = vmul.f32 %v1549_v31, %v1370_v62 }
 0x347   : > { %v1372_v6 = vpop.f32.mrf.mxu1 }
 0x348   : > { %v1566_v43 = vadd.f32 %v1558_v41, %v1538_v1  ;;  %v1559_v44 = vmul.f32 %v1553_v61, %v1372_v6 }
 0x349   : > { %v1376_v54 = vpop.f32.mrf.mxu1 }
 0x34a   : > { %v1567_v59 = vadd.f32 %v1559_v44, %v1539_v28  ;;  %v1560_v3 = vmul.f32 %v1549_v31, %v1376_v54 }
 0x34b   : > { %v1378_v45 = vpop.f32.mrf.mxu1 }
 0x34c   : > { %v1568_v12 = vadd.f32 %v1560_v3, %v1538_v1  ;;  %v1561_v42 = vmul.f32 %v1553_v61, %v1378_v45 }
 0x34d   : > { %v1382_v2 = vpop.f32.mrf.mxu1 }
 0x34e   : > { %v1569_v5 = vadd.f32 %v1561_v42, %v1539_v28  ;;  %v1493_v47 = vmul.f32 %v2185_v8, %v1382_v2 }
 0x34f   : > { %v1384_v4 = vpop.f32.mrf.mxu1 }
 0x350   : > { %v1494_v48 = vmul.f32 %v2187_v36, %v1384_v4 }
 0x352   : > { %v1497_v33 = vcombine.low %v1493_v47, %v1494_v48 }
 0x354   : > { %v1504_v0 = vrot.slane %v1497_v33, %v3031_v53 }
 0x356   : > { %v1511_v11 = vrot.slane %v1504_v0, %v3031_v53 }
 0x358   : > { %v1513_v46 = vadd.f32 %v1511_v11, %v1492_v32 }
 0x35a   : > { %1518 = vst.msk [vmem:[#allocation4] sm:$0x3] %vm2873_vm1, %v1513_v46 }
 0x361   : > { %v1582_v25 = vld [vmem:[#allocation4] sm:$0x3] }
 0x362   : > { %2188 = vrcp.f32 %v1582_v25 }
 0x36f   : > { %v2189_v26 = vpop.eup %2188 }
 0x370   : > { %v1584_v37 = vmul.f32 %v2189_v26, %v1582_v25 }
 0x372   : > { %v1585_v16 = vsub.f32 2.0, %v1584_v37 }
 0x374   : > { %v1586_v50 = vmul.f32 %v2189_v26, %v1585_v16 }
 0x376   : > { %v1599_v20 = vrot.slane %v1586_v50, %v3034_v39  ;;  %v1603_v17 = vrot.slane %v1586_v50, %v3036_v22 }
 0x378   : > { %v1606_v53 = vmul.f32 %v1599_v20, %v1562_v56  ;;  %v1607_v15 = vmul.f32 %v1603_v17, %v1563_v51  ;;  %v1608_v30 = vmul.f32 %v1599_v20, %v1564_v10  ;;  %v1609_v9 = vmul.f32 %v1603_v17, %v1565_v55 }
 0x379   : > { %v1610_v38 = vmul.f32 %v1599_v20, %v1566_v43  ;;  %v1611_v29 = vmul.f32 %v1603_v17, %v1567_v59  ;;  %v1612_v27 = vmul.f32 %v1599_v20, %v1568_v12  ;;  %v1613_v39 = vmul.f32 %v1603_v17, %v1569_v5 }
 0x37a   : > { %1614 = vst [vmem:[%s247_s19] sm:$0xff] %v1606_v53  ;;  %1615 = vst [vmem:[%s247_s19 + $0x8] sm:$0xff] %v1607_v15 }
 0x37b   : > { %1616 = vst [vmem:[%s247_s19 + $0x10] sm:$0xff] %v1608_v30  ;;  %1617 = vst [vmem:[%s247_s19 + $0x18] sm:$0xff] %v1609_v9 }
 0x37c   : > { %1618 = vst [vmem:[%s247_s19 + $0x20] sm:$0xff] %v1610_v38  ;;  %1619 = vst [vmem:[%s247_s19 + $0x28] sm:$0xff] %v1611_v29 }
 0x37d   : > { %1620 = vst [vmem:[%s247_s19 + $0x30] sm:$0xff] %v1612_v27  ;;  %1621 = vst [vmem:[%s247_s19 + $0x38] sm:$0xff] %v1613_v39 }
 0x37e   : > { %2203 = shalt.err (!%p2200_p5)
}
 0x37f   : > { %s2204_s5 = scalar_lea.hbm %s3060_s27, 1024  ;;  %s2208_s8 = scalar_lea.hbm %s3112_s3, 2048 }
 0x380   : > { %p2205_p6 = scmp.ne.s32.totalorder %s3060_s27, %s2204_s5  ;;  %p2209_p10 = scmp.lt.s32.totalorder %s3060_s27, %s3112_s3 }
 0x381   : > { %p2210_p11 = scmp.lt.s32.totalorder %s2208_s8, %s2204_s5 }
 0x382   : > { %p2206_p7 = pnand %p2205_p6, %p2334_p4 }
 0x383   : > { %p2211_p12 = por %p2210_p11, %p2209_p10 }
 0x384   : > { %p2207_p9 = pneg %p2206_p7 }
 0x386   : > { %p2212_p13 = pnand %p2211_p12, %p2207_p9 }
 0x388   : > { %2215 = shalt.err (!%p2212_p13)
}
 0x389   : > { %s2272_s11 = smov 256   ;;  %s2273_s18 = smov 16  }
 0x38a   : > { %1937 = dma.vmem_to_hbm [thread:$0]  (%p2334_p4), %s3062_s21, 1024, %s3060_s27, %s3064_s15, %s2272_s11, %s2272_s11, %s2273_s18  }
 0x38b PF: > { %p1943_p0 = scmp.ge.s32.totalorder %s2266_s17, 2  ;;  %s1653_s19 = sand.u32 1, %s2246_s12  }
 0x38c   : > { %s1654_s23 = scalar_lea.sflag [#allocation7], %s1653_s19 }
 0x38d   : > { %p1940_p1 = pnand %p1943_p0, %p2341_p8 }
 0x38f   : > { %p1941_p2 = pneg %p1940_p1 }
 0x391   : > { %2241 = dma.done.wait (%p1941_p2), %s1654_s23, 1024  }
 0x392   : > { %2243 = vsyncadd (%p1941_p2), %s1654_s23, 4294966272  ;;  %s16_s17 = sadd.s32 1, %s2266_s17   ;;  %s3177_s12 = smov %s2250_s13 }
 0x393   : > { %p13_p3 = scmp.ge.s32.totalorder %s16_s17, 4   ;;  %s3178_s13 = smov %s2254_s14 }
 0x394   : > { %s3179_s14 = smov %s2347_s25  ;;  %s3180_s15 = smov %s2262_s16 }
 0x395   : > { %s3181_s16 = smov %s3183_s20  ;;  %15 = sbr.rel (!%p13_p3) target bundleno = 4 (0x4), region = 81 }
 0x39a   :  { %1659 = vsyncpa [#allocation7], 1 }
 0x39b   :  { %1661 = vsyncpa [#allocation7 + $0x1], 1 }

</bundles_post_ra>
